<compile_context>
chip_gen: v5e
topology: v5e:2x2
jax: 0.10.0
libtpu: 0.0.40
codegen_flags: <defaults>
</compile_context>

<pallas_src>
import numpy as np
import jax
import jax.numpy as jnp
from jax import lax
from jax.experimental import pallas as pl
from jax.experimental.pallas import tpu as pltpu

NEG_BIG = -3.4028235e38  # finite f32 lowest: 0 * NEG_BIG == 0 (no NaN in one-hot matmuls)


def _vmem():
    return pl.BlockSpec(memory_space=pltpu.MemorySpace.VMEM)


def _smem():
    return pl.BlockSpec(memory_space=pltpu.MemorySpace.SMEM)


# ------------------------------ fused forward kernel ---------------------------------
def _fused_graphconv_kernel(tpar_ref,                       # SMEM (4,): tw1, tb1, tw2, tb2
                            hist1_ref, idx1_ref, oh1_ref,   # (E1,D), (E1,1), (V,E1)
                            gat2_ref, idx2_ref, oh2_ref,    # (E2,V), (E2,1), (V,E2)
                            off_src_ref, off_idx_ref,       # (Eo,D), (Eo,1)
                            t_ref,                          # (1,V) row
                            aw1_ref, ab1_ref, aw2_ref, ab2_ref,
                            out_ref):                       # (V, 2D): [emb | offset]
    aw1 = aw1_ref[...]
    ab1 = ab1_ref[...]
    aw2 = aw2_ref[...]
    ab2 = ab2_ref[...]
    V = out_ref.shape[0]

    def attention(src, idx, oh_ve, normalize):
        # Linear -> relu -> Linear (weights pre-transposed to (in, out)).
        h1 = jnp.maximum(jnp.dot(src, aw1, preferred_element_type=jnp.float32) + ab1, 0.0)
        s = jnp.dot(h1, aw2, preferred_element_type=jnp.float32) + ab2            # (E, D)

        # Per-GROUP max (matches torch_scatter.scatter_softmax): static unroll over V,
        # each step a cheap 2-D masked max — never builds an (E, V, D) tensor.
        edge_max = jnp.full_like(s, NEG_BIG)
        for v in range(V):
            mask = idx == v                                                       # (E, 1)
            m_v = jnp.max(jnp.where(mask, s, NEG_BIG), axis=0, keepdims=True)     # (1, D)
            edge_max = jnp.where(mask, m_v, edge_max)                             # (E, D)
        p = jnp.exp(s - edge_max)                                                 # (E, D)

        # scatter_softmax + scatter_sum with the division at GROUP granularity.
        # One-hots arrive pre-transposed as (V, E): plain jnp.dot, no XLU transpose.
        den = jnp.dot(oh_ve, p, preferred_element_type=jnp.float32)               # (V, D)
        num = jnp.dot(oh_ve, p * src, preferred_element_type=jnp.float32)         # (V, D)
        # Non-empty groups have den >= 1 (per-group max shift); empty groups -> exactly 0.
        out = num * pl.reciprocal(jnp.maximum(den, 1.0), approx=True)
        if normalize:  # F.normalize(p=2, dim=1, eps=1e-12)
            nrm2 = jnp.sum(out * out, axis=1, keepdims=True)
            out = out * lax.rsqrt(jnp.maximum(nrm2, 1e-24))
        return out

    # ---- stage 1: center_net over entity->visit history -----------------------------
    agg1 = attention(hist1_ref[...], idx1_ref[...], oh1_ref[...], normalize=False)  # (V, D)

    # ---- stage 2: time decay: 1/t -> Linear(1,1) -> relu -> Linear(1,1) -> softmax ---
    # Kept as a (1, V) ROW: the softmax reduces across lanes inside one vreg.
    tw1 = tpar_ref[0]
    tb1 = tpar_ref[1]
    tw2 = tpar_ref[2]
    tb2 = tpar_ref[3]
    inv_t = pl.reciprocal(t_ref[...], approx=True)                                # (1, V)
    h = jnp.maximum(inv_t * tw1 + tb1, 0.0)
    y = h * tw2 + tb2
    y = y - jnp.max(y, axis=1, keepdims=True)
    e = jnp.exp(y)
    time_row = e * pl.reciprocal(jnp.sum(e, axis=1, keepdims=True), approx=True)  # (1, V)

    # ---- stage 3: gather agg2 = agg1 * time for visit->visit edges. The per-visit time
    # scale is folded into the gather one-hot (lane-axis broadcast), so no (V,1) column
    # or transpose is needed; the scaled gather rides the MXU matmul for free. ----------
    hist2 = jnp.dot(gat2_ref[...] * time_row, agg1,
                    preferred_element_type=jnp.float32)                           # (E2, D)
    emb = attention(hist2, idx2_ref[...], oh2_ref[...], normalize=True)           # (V, D)

    # ---- stage 4: offset path: ONE segment-max over all concatenated offset edges,
    # statically unrolled over V (2-D masked max per output row). The 0.0 fill is exact
    # because all offsets are relu'd >= 0 on the host (and the module relu's the result).
    off_src = off_src_ref[...]                                                    # (Eo, D)
    off_idx = off_idx_ref[...]                                                    # (Eo, 1)
    rows = []
    for v in range(V):
        m = off_idx == v
        rows.append(jnp.max(jnp.where(m, off_src, 0.0), axis=0, keepdims=True))   # (1, D)
    off = jnp.maximum(jnp.concatenate(rows, axis=0), 0.0)                         # (V, D)

    # single fused output slab: [:, :D] = visit_final_emb, [:, D:] = visit_final_offset
    out_ref[...] = jnp.concatenate([emb, off], axis=1)


# ----------------------------------- parameters --------------------------------------
def init_params(key, emb_size):
    ks = jax.random.split(key, 8)
    xav = float(np.sqrt(6.0 / (emb_size + emb_size)))     # xavier_uniform for (D, D)
    bb = float(1.0 / np.sqrt(emb_size))                   # PyTorch Linear bias default
    aw1 = jax.random.uniform(ks[0], (emb_size, emb_size), jnp.float32, -xav, xav)
    ab1 = jax.random.uniform(ks[1], (1, emb_size), jnp.float32, -bb, bb)
    aw2 = jax.random.uniform(ks[2], (emb_size, emb_size), jnp.float32, -xav, xav)
    ab2 = jax.random.uniform(ks[3], (1, emb_size), jnp.float32, -bb, bb)
    txav = float(np.sqrt(6.0 / 2.0))                      # xavier_uniform for (1, 1)
    tw1 = jax.random.uniform(ks[4], (), jnp.float32, -txav, txav)
    tb1 = jax.random.uniform(ks[5], (), jnp.float32, -1.0, 1.0)
    tw2 = jax.random.uniform(ks[6], (), jnp.float32, -txav, txav)
    tb2 = jax.random.uniform(ks[7], (), jnp.float32, -1.0, 1.0)
    tparams = jnp.stack([tw1, tb1, tw2, tb2]).astype(jnp.float32)   # SMEM payload
    return (aw1, ab1, aw2, ab2, tparams)


# ------------------------------------ forward ----------------------------------------
def graph_conv_forward(params, visit_center, visit_offset, ccs_center, ccs_offset,
                       icd_center, icd_offset, head, tail, visit_time,
                       n_visits, n_ccss, n_icds):
    (aw1, ab1, aw2, ab2, tparams) = params
    head = np.asarray(head)
    tail = np.asarray(tail)

    all_center = jnp.concatenate([visit_center, ccs_center, icd_center], axis=0)
    all_offset = jnp.maximum(
        jnp.concatenate([visit_offset, ccs_offset, icd_offset], axis=0), 0.0)

    # Static (numpy) edge-set selection; mirrors the boolean masks of the torch module.
    ent_vis = (head < n_visits) & (tail >= n_visits)
    vis_vis = (head < n_visits) & (tail < n_visits)
    iv = (head < n_visits) & (tail >= n_visits) & (tail < n_visits + n_ccss)
    vi = (head < n_visits) & (tail >= n_visits + n_ccss)

    V = int(n_visits)
    D = int(all_center.shape[1])

    def col(a):
        return jnp.asarray(np.asarray(a).reshape(-1, 1), dtype=jnp.int32)

    def scatter_onehot(idx):      # (V, E) f32: row v selects edges whose head == v
        idx = np.asarray(idx).reshape(-1)
        return jnp.asarray((np.arange(V)[:, None] == idx[None, :]).astype(np.float32))

    # stage-1 inputs: gathered entity history embeddings + scatter one-hot
    hist1 = all_center[tail[ent_vis]]                                  # (E1, D)
    idx1 = col(head[ent_vis])                                          # (E1, 1)
    oh1 = scatter_onehot(head[ent_vis])                                # (V, E1)

    # stage-3 inputs: visit->visit gather one-hot + scatter one-hot
    tail2 = np.asarray(tail[vis_vis]).reshape(-1)
    gat2 = jnp.asarray((tail2[:, None] == np.arange(V)[None, :]).astype(np.float32))  # (E2, V)
    idx2 = col(head[vis_vis])                                          # (E2, 1)
    oh2 = scatter_onehot(head[vis_vis])                                # (V, E2)

    # Offset path: the original 3x scatter_max + union scatter_max + relu collapse into a
    # single segment-max over the concatenated offset edge sets (all values >= 0 and the
    # union index is arange(n_visits) tiled 3x), so the result is identical.
    off_src = jnp.concatenate([all_offset[tail[iv]],
                               all_offset[tail[vi]],
                               all_offset[tail[vis_vis]]], axis=0)     # (Eo, D)
    off_idx = col(np.concatenate([head[iv], head[vi], head[vis_vis]])) # (Eo, 1)

    t = jnp.asarray(visit_time, jnp.float32).reshape(1, -1)            # (1, V) row layout

    out = pl.pallas_call(
        _fused_graphconv_kernel,
        out_shape=jax.ShapeDtypeStruct((V, 2 * D), jnp.float32),
        in_specs=[_smem()] + [_vmem() for _ in range(13)],
        out_specs=_vmem(),
    )(tparams, hist1, idx1, oh1, gat2, idx2, oh2, off_src, off_idx, t,
      aw1, ab1, aw2, ab2)
    return out[:, :D], out[:, D:]


if __name__ == "__main__":
    emb_size = 32
    n_visits, n_ccss, n_icds = 8, 4, 4

    # Synthetic deterministic sparse graph (replaces graph2._indices()).
    heads, tails = [], []
    for v in range(n_visits):
        heads += [v, v]
        tails += [n_visits + (v % n_ccss), n_visits + ((v + 1) % n_ccss)]    # visit->ccs
        heads += [v]
        tails += [n_visits + n_ccss + (v % n_icds)]                           # visit->icd
    for v in range(1, n_visits):
        heads += [v]
        tails += [v - 1]                                                      # visit->visit
    for v in range(n_visits):                                                 # reverse edges
        heads += [n_visits + (v % n_ccss)]
        tails += [v]
    head = np.array(heads, dtype=np.int32)
    tail = np.array(tails, dtype=np.int32)

    key = jax.random.PRNGKey(0)
    keys = jax.random.split(key, 9)
    params = init_params(keys[0], emb_size)
    visit_center = jax.random.normal(keys[1], (n_visits, emb_size), jnp.float32)
    visit_offset = jax.random.normal(keys[2], (n_visits, emb_size), jnp.float32)
    ccs_center = jax.random.normal(keys[3], (n_ccss, emb_size), jnp.float32)
    ccs_offset = jax.random.normal(keys[4], (n_ccss, emb_size), jnp.float32)
    icd_center = jax.random.normal(keys[5], (n_icds, emb_size), jnp.float32)
    icd_offset = jax.random.normal(keys[6], (n_icds, emb_size), jnp.float32)
    # TODO(synk): original module loads 'mimic3_0.05/visit_time.pt'; synthesized here.
    visit_time = jax.random.uniform(keys[7], (n_visits,), jnp.float32, 1.0, 10.0)

    emb, off = graph_conv_forward(params, visit_center, visit_offset, ccs_center,
                                  ccs_offset, icd_center, icd_offset, head, tail,
                                  visit_time, n_visits, n_ccss, n_icds)
    jax.block_until_ready((emb, off))
    assert emb.shape == (n_visits, emb_size) and off.shape == (n_visits, emb_size)
    print("KERNEL_OK")
</pallas_src>

<mosaic_0001>
module attributes {stable_mosaic.version = 11 : i64} {
  func.func @_fused_graphconv_kernel(%arg0: memref<4xf32, #tpu.memory_space<smem>>, %arg1: memref<24x32xf32, #tpu.memory_space<vmem>>, %arg2: memref<24x1xi32, #tpu.memory_space<vmem>>, %arg3: memref<8x24xf32, #tpu.memory_space<vmem>>, %arg4: memref<7x8xf32, #tpu.memory_space<vmem>>, %arg5: memref<7x1xi32, #tpu.memory_space<vmem>>, %arg6: memref<8x7xf32, #tpu.memory_space<vmem>>, %arg7: memref<31x32xf32, #tpu.memory_space<vmem>>, %arg8: memref<31x1xi32, #tpu.memory_space<vmem>>, %arg9: memref<1x8xf32, #tpu.memory_space<vmem>>, %arg10: memref<32x32xf32, #tpu.memory_space<vmem>>, %arg11: memref<1x32xf32, #tpu.memory_space<vmem>>, %arg12: memref<32x32xf32, #tpu.memory_space<vmem>>, %arg13: memref<1x32xf32, #tpu.memory_space<vmem>>, %arg14: memref<8x64xf32, #tpu.memory_space<vmem>>) attributes {dimension_semantics = [], scalar_prefetch = 0 : i64, scratch_operands = 0 : i64, tpu.core_type = #tpu.core_type<tc>} {
    %c0 = arith.constant 0 : index
    %c0_0 = arith.constant 0 : index
    %0 = vector.load %arg10[%c0, %c0_0] : memref<32x32xf32, #tpu.memory_space<vmem>>, vector<32x32xf32>
    %c0_1 = arith.constant 0 : index
    %c0_2 = arith.constant 0 : index
    %1 = vector.load %arg11[%c0_1, %c0_2] : memref<1x32xf32, #tpu.memory_space<vmem>>, vector<1x32xf32>
    %c0_3 = arith.constant 0 : index
    %c0_4 = arith.constant 0 : index
    %2 = vector.load %arg12[%c0_3, %c0_4] : memref<32x32xf32, #tpu.memory_space<vmem>>, vector<32x32xf32>
    %c0_5 = arith.constant 0 : index
    %c0_6 = arith.constant 0 : index
    %3 = vector.load %arg13[%c0_5, %c0_6] : memref<1x32xf32, #tpu.memory_space<vmem>>, vector<1x32xf32>
    %c0_7 = arith.constant 0 : index
    %c0_8 = arith.constant 0 : index
    %4 = vector.load %arg1[%c0_7, %c0_8] : memref<24x32xf32, #tpu.memory_space<vmem>>, vector<24x32xf32>
    %c0_9 = arith.constant 0 : index
    %c0_10 = arith.constant 0 : index
    %5 = vector.load %arg2[%c0_9, %c0_10] : memref<24x1xi32, #tpu.memory_space<vmem>>, vector<24x1xi32>
    %c0_11 = arith.constant 0 : index
    %c0_12 = arith.constant 0 : index
    %6 = vector.load %arg3[%c0_11, %c0_12] : memref<8x24xf32, #tpu.memory_space<vmem>>, vector<8x24xf32>
    %cst = arith.constant dense<0.000000e+00> : vector<24x32xf32>
    %7 = tpu.matmul %4, %0, %cst {dimension_numbers = #tpu.dot_dimension_numbers<[1], [0], [0], [1], [0, 0, 1, 1], [], []>} : vector<24x32xf32>, vector<32x32xf32>, vector<24x32xf32> -> vector<24x32xf32>
    %8 = vector.broadcast %1 : vector<1x32xf32> to vector<24x32xf32>
    %9 = arith.addf %7, %8 : vector<24x32xf32>
    %cst_13 = arith.constant 0.000000e+00 : f32
    %10 = vector.broadcast %cst_13 : f32 to vector<24x32xf32>
    %11 = arith.maximumf %9, %10 : vector<24x32xf32>
    %cst_14 = arith.constant dense<0.000000e+00> : vector<24x32xf32>
    %12 = tpu.matmul %11, %2, %cst_14 {dimension_numbers = #tpu.dot_dimension_numbers<[1], [0], [0], [1], [0, 0, 1, 1], [], []>} : vector<24x32xf32>, vector<32x32xf32>, vector<24x32xf32> -> vector<24x32xf32>
    %13 = vector.broadcast %3 : vector<1x32xf32> to vector<24x32xf32>
    %14 = arith.addf %12, %13 : vector<24x32xf32>
    %cst_15 = arith.constant -3.40282347E+38 : f32
    %15 = vector.broadcast %cst_15 : f32 to vector<24x32xf32>
    %c0_i32 = arith.constant 0 : i32
    %16 = vector.broadcast %c0_i32 : i32 to vector<24x1xi32>
    %17 = arith.cmpi eq, %5, %16 : vector<24x1xi32>
    %cst_16 = arith.constant -3.40282347E+38 : f32
    %18 = vector.shape_cast %17 : vector<24x1xi1> to vector<24x1xi1>
    %19 = vector.broadcast %18 : vector<24x1xi1> to vector<24x32xi1>
    %20 = vector.broadcast %cst_16 : f32 to vector<24x32xf32>
    %21 = arith.select %19, %14, %20 : vector<24x32xi1>, vector<24x32xf32>
    %cst_17 = arith.constant dense<0xFF800000> : vector<32xf32>
    %22 = vector.multi_reduction <maximumf>, %21, %cst_17 [0] : vector<24x32xf32> to vector<32xf32>
    %23 = vector.shape_cast %22 : vector<32xf32> to vector<1x32xf32>
    %24 = vector.shape_cast %17 : vector<24x1xi1> to vector<24x1xi1>
    %25 = vector.broadcast %24 : vector<24x1xi1> to vector<24x32xi1>
    %26 = vector.shape_cast %23 : vector<1x32xf32> to vector<1x32xf32>
    %27 = vector.broadcast %26 : vector<1x32xf32> to vector<24x32xf32>
    %28 = arith.select %25, %27, %15 : vector<24x32xi1>, vector<24x32xf32>
    %c1_i32 = arith.constant 1 : i32
    %29 = vector.broadcast %c1_i32 : i32 to vector<24x1xi32>
    %30 = arith.cmpi eq, %5, %29 : vector<24x1xi32>
    %cst_18 = arith.constant -3.40282347E+38 : f32
    %31 = vector.shape_cast %30 : vector<24x1xi1> to vector<24x1xi1>
    %32 = vector.broadcast %31 : vector<24x1xi1> to vector<24x32xi1>
    %33 = vector.broadcast %cst_18 : f32 to vector<24x32xf32>
    %34 = arith.select %32, %14, %33 : vector<24x32xi1>, vector<24x32xf32>
    %cst_19 = arith.constant dense<0xFF800000> : vector<32xf32>
    %35 = vector.multi_reduction <maximumf>, %34, %cst_19 [0] : vector<24x32xf32> to vector<32xf32>
    %36 = vector.shape_cast %35 : vector<32xf32> to vector<1x32xf32>
    %37 = vector.shape_cast %30 : vector<24x1xi1> to vector<24x1xi1>
    %38 = vector.broadcast %37 : vector<24x1xi1> to vector<24x32xi1>
    %39 = vector.shape_cast %36 : vector<1x32xf32> to vector<1x32xf32>
    %40 = vector.broadcast %39 : vector<1x32xf32> to vector<24x32xf32>
    %41 = arith.select %38, %40, %28 : vector<24x32xi1>, vector<24x32xf32>
    %c2_i32 = arith.constant 2 : i32
    %42 = vector.broadcast %c2_i32 : i32 to vector<24x1xi32>
    %43 = arith.cmpi eq, %5, %42 : vector<24x1xi32>
    %cst_20 = arith.constant -3.40282347E+38 : f32
    %44 = vector.shape_cast %43 : vector<24x1xi1> to vector<24x1xi1>
    %45 = vector.broadcast %44 : vector<24x1xi1> to vector<24x32xi1>
    %46 = vector.broadcast %cst_20 : f32 to vector<24x32xf32>
    %47 = arith.select %45, %14, %46 : vector<24x32xi1>, vector<24x32xf32>
    %cst_21 = arith.constant dense<0xFF800000> : vector<32xf32>
    %48 = vector.multi_reduction <maximumf>, %47, %cst_21 [0] : vector<24x32xf32> to vector<32xf32>
    %49 = vector.shape_cast %48 : vector<32xf32> to vector<1x32xf32>
    %50 = vector.shape_cast %43 : vector<24x1xi1> to vector<24x1xi1>
    %51 = vector.broadcast %50 : vector<24x1xi1> to vector<24x32xi1>
    %52 = vector.shape_cast %49 : vector<1x32xf32> to vector<1x32xf32>
    %53 = vector.broadcast %52 : vector<1x32xf32> to vector<24x32xf32>
    %54 = arith.select %51, %53, %41 : vector<24x32xi1>, vector<24x32xf32>
    %c3_i32 = arith.constant 3 : i32
    %55 = vector.broadcast %c3_i32 : i32 to vector<24x1xi32>
    %56 = arith.cmpi eq, %5, %55 : vector<24x1xi32>
    %cst_22 = arith.constant -3.40282347E+38 : f32
    %57 = vector.shape_cast %56 : vector<24x1xi1> to vector<24x1xi1>
    %58 = vector.broadcast %57 : vector<24x1xi1> to vector<24x32xi1>
    %59 = vector.broadcast %cst_22 : f32 to vector<24x32xf32>
    %60 = arith.select %58, %14, %59 : vector<24x32xi1>, vector<24x32xf32>
    %cst_23 = arith.constant dense<0xFF800000> : vector<32xf32>
    %61 = vector.multi_reduction <maximumf>, %60, %cst_23 [0] : vector<24x32xf32> to vector<32xf32>
    %62 = vector.shape_cast %61 : vector<32xf32> to vector<1x32xf32>
    %63 = vector.shape_cast %56 : vector<24x1xi1> to vector<24x1xi1>
    %64 = vector.broadcast %63 : vector<24x1xi1> to vector<24x32xi1>
    %65 = vector.shape_cast %62 : vector<1x32xf32> to vector<1x32xf32>
    %66 = vector.broadcast %65 : vector<1x32xf32> to vector<24x32xf32>
    %67 = arith.select %64, %66, %54 : vector<24x32xi1>, vector<24x32xf32>
    %c4_i32 = arith.constant 4 : i32
    %68 = vector.broadcast %c4_i32 : i32 to vector<24x1xi32>
    %69 = arith.cmpi eq, %5, %68 : vector<24x1xi32>
    %cst_24 = arith.constant -3.40282347E+38 : f32
    %70 = vector.shape_cast %69 : vector<24x1xi1> to vector<24x1xi1>
    %71 = vector.broadcast %70 : vector<24x1xi1> to vector<24x32xi1>
    %72 = vector.broadcast %cst_24 : f32 to vector<24x32xf32>
    %73 = arith.select %71, %14, %72 : vector<24x32xi1>, vector<24x32xf32>
    %cst_25 = arith.constant dense<0xFF800000> : vector<32xf32>
    %74 = vector.multi_reduction <maximumf>, %73, %cst_25 [0] : vector<24x32xf32> to vector<32xf32>
    %75 = vector.shape_cast %74 : vector<32xf32> to vector<1x32xf32>
    %76 = vector.shape_cast %69 : vector<24x1xi1> to vector<24x1xi1>
    %77 = vector.broadcast %76 : vector<24x1xi1> to vector<24x32xi1>
    %78 = vector.shape_cast %75 : vector<1x32xf32> to vector<1x32xf32>
    %79 = vector.broadcast %78 : vector<1x32xf32> to vector<24x32xf32>
    %80 = arith.select %77, %79, %67 : vector<24x32xi1>, vector<24x32xf32>
    %c5_i32 = arith.constant 5 : i32
    %81 = vector.broadcast %c5_i32 : i32 to vector<24x1xi32>
    %82 = arith.cmpi eq, %5, %81 : vector<24x1xi32>
    %cst_26 = arith.constant -3.40282347E+38 : f32
    %83 = vector.shape_cast %82 : vector<24x1xi1> to vector<24x1xi1>
    %84 = vector.broadcast %83 : vector<24x1xi1> to vector<24x32xi1>
    %85 = vector.broadcast %cst_26 : f32 to vector<24x32xf32>
    %86 = arith.select %84, %14, %85 : vector<24x32xi1>, vector<24x32xf32>
    %cst_27 = arith.constant dense<0xFF800000> : vector<32xf32>
    %87 = vector.multi_reduction <maximumf>, %86, %cst_27 [0] : vector<24x32xf32> to vector<32xf32>
    %88 = vector.shape_cast %87 : vector<32xf32> to vector<1x32xf32>
    %89 = vector.shape_cast %82 : vector<24x1xi1> to vector<24x1xi1>
    %90 = vector.broadcast %89 : vector<24x1xi1> to vector<24x32xi1>
    %91 = vector.shape_cast %88 : vector<1x32xf32> to vector<1x32xf32>
    %92 = vector.broadcast %91 : vector<1x32xf32> to vector<24x32xf32>
    %93 = arith.select %90, %92, %80 : vector<24x32xi1>, vector<24x32xf32>
    %c6_i32 = arith.constant 6 : i32
    %94 = vector.broadcast %c6_i32 : i32 to vector<24x1xi32>
    %95 = arith.cmpi eq, %5, %94 : vector<24x1xi32>
    %cst_28 = arith.constant -3.40282347E+38 : f32
    %96 = vector.shape_cast %95 : vector<24x1xi1> to vector<24x1xi1>
    %97 = vector.broadcast %96 : vector<24x1xi1> to vector<24x32xi1>
    %98 = vector.broadcast %cst_28 : f32 to vector<24x32xf32>
    %99 = arith.select %97, %14, %98 : vector<24x32xi1>, vector<24x32xf32>
    %cst_29 = arith.constant dense<0xFF800000> : vector<32xf32>
    %100 = vector.multi_reduction <maximumf>, %99, %cst_29 [0] : vector<24x32xf32> to vector<32xf32>
    %101 = vector.shape_cast %100 : vector<32xf32> to vector<1x32xf32>
    %102 = vector.shape_cast %95 : vector<24x1xi1> to vector<24x1xi1>
    %103 = vector.broadcast %102 : vector<24x1xi1> to vector<24x32xi1>
    %104 = vector.shape_cast %101 : vector<1x32xf32> to vector<1x32xf32>
    %105 = vector.broadcast %104 : vector<1x32xf32> to vector<24x32xf32>
    %106 = arith.select %103, %105, %93 : vector<24x32xi1>, vector<24x32xf32>
    %c7_i32 = arith.constant 7 : i32
    %107 = vector.broadcast %c7_i32 : i32 to vector<24x1xi32>
    %108 = arith.cmpi eq, %5, %107 : vector<24x1xi32>
    %cst_30 = arith.constant -3.40282347E+38 : f32
    %109 = vector.shape_cast %108 : vector<24x1xi1> to vector<24x1xi1>
    %110 = vector.broadcast %109 : vector<24x1xi1> to vector<24x32xi1>
    %111 = vector.broadcast %cst_30 : f32 to vector<24x32xf32>
    %112 = arith.select %110, %14, %111 : vector<24x32xi1>, vector<24x32xf32>
    %cst_31 = arith.constant dense<0xFF800000> : vector<32xf32>
    %113 = vector.multi_reduction <maximumf>, %112, %cst_31 [0] : vector<24x32xf32> to vector<32xf32>
    %114 = vector.shape_cast %113 : vector<32xf32> to vector<1x32xf32>
    %115 = vector.shape_cast %108 : vector<24x1xi1> to vector<24x1xi1>
    %116 = vector.broadcast %115 : vector<24x1xi1> to vector<24x32xi1>
    %117 = vector.shape_cast %114 : vector<1x32xf32> to vector<1x32xf32>
    %118 = vector.broadcast %117 : vector<1x32xf32> to vector<24x32xf32>
    %119 = arith.select %116, %118, %106 : vector<24x32xi1>, vector<24x32xf32>
    %120 = arith.subf %14, %119 : vector<24x32xf32>
    %121 = math.exp %120 : vector<24x32xf32>
    %cst_32 = arith.constant dense<0.000000e+00> : vector<8x32xf32>
    %122 = tpu.matmul %6, %121, %cst_32 {dimension_numbers = #tpu.dot_dimension_numbers<[1], [0], [0], [1], [0, 0, 1, 1], [], []>} : vector<8x24xf32>, vector<24x32xf32>, vector<8x32xf32> -> vector<8x32xf32>
    %123 = arith.mulf %121, %4 : vector<24x32xf32>
    %cst_33 = arith.constant dense<0.000000e+00> : vector<8x32xf32>
    %124 = tpu.matmul %6, %123, %cst_33 {dimension_numbers = #tpu.dot_dimension_numbers<[1], [0], [0], [1], [0, 0, 1, 1], [], []>} : vector<8x24xf32>, vector<24x32xf32>, vector<8x32xf32> -> vector<8x32xf32>
    %cst_34 = arith.constant 1.000000e+00 : f32
    %125 = vector.broadcast %cst_34 : f32 to vector<8x32xf32>
    %126 = arith.maximumf %122, %125 : vector<8x32xf32>
    %127 = tpu.reciprocal %126 {approx = true} : vector<8x32xf32> -> vector<8x32xf32>
    %128 = arith.mulf %124, %127 : vector<8x32xf32>
    %c0_35 = arith.constant 0 : index
    %129 = memref.load %arg0[%c0_35] : memref<4xf32, #tpu.memory_space<smem>>
    %c1 = arith.constant 1 : index
    %130 = memref.load %arg0[%c1] : memref<4xf32, #tpu.memory_space<smem>>
    %c2 = arith.constant 2 : index
    %131 = memref.load %arg0[%c2] : memref<4xf32, #tpu.memory_space<smem>>
    %c3 = arith.constant 3 : index
    %132 = memref.load %arg0[%c3] : memref<4xf32, #tpu.memory_space<smem>>
    %c0_36 = arith.constant 0 : index
    %c0_37 = arith.constant 0 : index
    %133 = vector.load %arg9[%c0_36, %c0_37] : memref<1x8xf32, #tpu.memory_space<vmem>>, vector<1x8xf32>
    %134 = tpu.reciprocal %133 {approx = true} : vector<1x8xf32> -> vector<1x8xf32>
    %135 = vector.broadcast %129 : f32 to vector<1x8xf32>
    %136 = arith.mulf %134, %135 : vector<1x8xf32>
    %137 = vector.broadcast %130 : f32 to vector<1x8xf32>
    %138 = arith.addf %136, %137 : vector<1x8xf32>
    %cst_38 = arith.constant 0.000000e+00 : f32
    %139 = vector.broadcast %cst_38 : f32 to vector<1x8xf32>
    %140 = arith.maximumf %138, %139 : vector<1x8xf32>
    %141 = vector.broadcast %131 : f32 to vector<1x8xf32>
    %142 = arith.mulf %140, %141 : vector<1x8xf32>
    %143 = vector.broadcast %132 : f32 to vector<1x8xf32>
    %144 = arith.addf %142, %143 : vector<1x8xf32>
    %cst_39 = arith.constant dense<0xFF800000> : vector<1xf32>
    %145 = vector.multi_reduction <maximumf>, %144, %cst_39 [1] : vector<1x8xf32> to vector<1xf32>
    %146 = vector.shape_cast %145 : vector<1xf32> to vector<1x1xf32>
    %147 = vector.broadcast %146 : vector<1x1xf32> to vector<1x8xf32>
    %148 = arith.subf %144, %147 : vector<1x8xf32>
    %149 = math.exp %148 : vector<1x8xf32>
    %cst_40 = arith.constant dense<0.000000e+00> : vector<1xf32>
    %150 = vector.multi_reduction <add>, %149, %cst_40 [1] : vector<1x8xf32> to vector<1xf32>
    %151 = vector.shape_cast %150 : vector<1xf32> to vector<1x1xf32>
    %152 = tpu.reciprocal %151 {approx = true} : vector<1x1xf32> -> vector<1x1xf32>
    %153 = vector.broadcast %152 : vector<1x1xf32> to vector<1x8xf32>
    %154 = arith.mulf %149, %153 : vector<1x8xf32>
    %c0_41 = arith.constant 0 : index
    %c0_42 = arith.constant 0 : index
    %155 = vector.load %arg4[%c0_41, %c0_42] : memref<7x8xf32, #tpu.memory_space<vmem>>, vector<7x8xf32>
    %156 = vector.broadcast %154 : vector<1x8xf32> to vector<7x8xf32>
    %157 = arith.mulf %155, %156 : vector<7x8xf32>
    %cst_43 = arith.constant dense<0.000000e+00> : vector<7x32xf32>
    %158 = tpu.matmul %157, %128, %cst_43 {dimension_numbers = #tpu.dot_dimension_numbers<[1], [0], [0], [1], [0, 0, 1, 1], [], []>} : vector<7x8xf32>, vector<8x32xf32>, vector<7x32xf32> -> vector<7x32xf32>
    %c0_44 = arith.constant 0 : index
    %c0_45 = arith.constant 0 : index
    %159 = vector.load %arg5[%c0_44, %c0_45] : memref<7x1xi32, #tpu.memory_space<vmem>>, vector<7x1xi32>
    %c0_46 = arith.constant 0 : index
    %c0_47 = arith.constant 0 : index
    %160 = vector.load %arg6[%c0_46, %c0_47] : memref<8x7xf32, #tpu.memory_space<vmem>>, vector<8x7xf32>
    %cst_48 = arith.constant dense<0.000000e+00> : vector<7x32xf32>
    %161 = tpu.matmul %158, %0, %cst_48 {dimension_numbers = #tpu.dot_dimension_numbers<[1], [0], [0], [1], [0, 0, 1, 1], [], []>} : vector<7x32xf32>, vector<32x32xf32>, vector<7x32xf32> -> vector<7x32xf32>
    %162 = vector.broadcast %1 : vector<1x32xf32> to vector<7x32xf32>
    %163 = arith.addf %161, %162 : vector<7x32xf32>
    %cst_49 = arith.constant 0.000000e+00 : f32
    %164 = vector.broadcast %cst_49 : f32 to vector<7x32xf32>
    %165 = arith.maximumf %163, %164 : vector<7x32xf32>
    %cst_50 = arith.constant dense<0.000000e+00> : vector<7x32xf32>
    %166 = tpu.matmul %165, %2, %cst_50 {dimension_numbers = #tpu.dot_dimension_numbers<[1], [0], [0], [1], [0, 0, 1, 1], [], []>} : vector<7x32xf32>, vector<32x32xf32>, vector<7x32xf32> -> vector<7x32xf32>
    %167 = vector.broadcast %3 : vector<1x32xf32> to vector<7x32xf32>
    %168 = arith.addf %166, %167 : vector<7x32xf32>
    %cst_51 = arith.constant -3.40282347E+38 : f32
    %169 = vector.broadcast %cst_51 : f32 to vector<7x32xf32>
    %c0_i32_52 = arith.constant 0 : i32
    %170 = vector.broadcast %c0_i32_52 : i32 to vector<7x1xi32>
    %171 = arith.cmpi eq, %159, %170 : vector<7x1xi32>
    %cst_53 = arith.constant -3.40282347E+38 : f32
    %172 = vector.shape_cast %171 : vector<7x1xi1> to vector<7x1xi1>
    %173 = vector.broadcast %172 : vector<7x1xi1> to vector<7x32xi1>
    %174 = vector.broadcast %cst_53 : f32 to vector<7x32xf32>
    %175 = arith.select %173, %168, %174 : vector<7x32xi1>, vector<7x32xf32>
    %cst_54 = arith.constant dense<0xFF800000> : vector<32xf32>
    %176 = vector.multi_reduction <maximumf>, %175, %cst_54 [0] : vector<7x32xf32> to vector<32xf32>
    %177 = vector.shape_cast %176 : vector<32xf32> to vector<1x32xf32>
    %178 = vector.shape_cast %171 : vector<7x1xi1> to vector<7x1xi1>
    %179 = vector.broadcast %178 : vector<7x1xi1> to vector<7x32xi1>
    %180 = vector.shape_cast %177 : vector<1x32xf32> to vector<1x32xf32>
    %181 = vector.broadcast %180 : vector<1x32xf32> to vector<7x32xf32>
    %182 = arith.select %179, %181, %169 : vector<7x32xi1>, vector<7x32xf32>
    %c1_i32_55 = arith.constant 1 : i32
    %183 = vector.broadcast %c1_i32_55 : i32 to vector<7x1xi32>
    %184 = arith.cmpi eq, %159, %183 : vector<7x1xi32>
    %cst_56 = arith.constant -3.40282347E+38 : f32
    %185 = vector.shape_cast %184 : vector<7x1xi1> to vector<7x1xi1>
    %186 = vector.broadcast %185 : vector<7x1xi1> to vector<7x32xi1>
    %187 = vector.broadcast %cst_56 : f32 to vector<7x32xf32>
    %188 = arith.select %186, %168, %187 : vector<7x32xi1>, vector<7x32xf32>
    %cst_57 = arith.constant dense<0xFF800000> : vector<32xf32>
    %189 = vector.multi_reduction <maximumf>, %188, %cst_57 [0] : vector<7x32xf32> to vector<32xf32>
    %190 = vector.shape_cast %189 : vector<32xf32> to vector<1x32xf32>
    %191 = vector.shape_cast %184 : vector<7x1xi1> to vector<7x1xi1>
    %192 = vector.broadcast %191 : vector<7x1xi1> to vector<7x32xi1>
    %193 = vector.shape_cast %190 : vector<1x32xf32> to vector<1x32xf32>
    %194 = vector.broadcast %193 : vector<1x32xf32> to vector<7x32xf32>
    %195 = arith.select %192, %194, %182 : vector<7x32xi1>, vector<7x32xf32>
    %c2_i32_58 = arith.constant 2 : i32
    %196 = vector.broadcast %c2_i32_58 : i32 to vector<7x1xi32>
    %197 = arith.cmpi eq, %159, %196 : vector<7x1xi32>
    %cst_59 = arith.constant -3.40282347E+38 : f32
    %198 = vector.shape_cast %197 : vector<7x1xi1> to vector<7x1xi1>
    %199 = vector.broadcast %198 : vector<7x1xi1> to vector<7x32xi1>
    %200 = vector.broadcast %cst_59 : f32 to vector<7x32xf32>
    %201 = arith.select %199, %168, %200 : vector<7x32xi1>, vector<7x32xf32>
    %cst_60 = arith.constant dense<0xFF800000> : vector<32xf32>
    %202 = vector.multi_reduction <maximumf>, %201, %cst_60 [0] : vector<7x32xf32> to vector<32xf32>
    %203 = vector.shape_cast %202 : vector<32xf32> to vector<1x32xf32>
    %204 = vector.shape_cast %197 : vector<7x1xi1> to vector<7x1xi1>
    %205 = vector.broadcast %204 : vector<7x1xi1> to vector<7x32xi1>
    %206 = vector.shape_cast %203 : vector<1x32xf32> to vector<1x32xf32>
    %207 = vector.broadcast %206 : vector<1x32xf32> to vector<7x32xf32>
    %208 = arith.select %205, %207, %195 : vector<7x32xi1>, vector<7x32xf32>
    %c3_i32_61 = arith.constant 3 : i32
    %209 = vector.broadcast %c3_i32_61 : i32 to vector<7x1xi32>
    %210 = arith.cmpi eq, %159, %209 : vector<7x1xi32>
    %cst_62 = arith.constant -3.40282347E+38 : f32
    %211 = vector.shape_cast %210 : vector<7x1xi1> to vector<7x1xi1>
    %212 = vector.broadcast %211 : vector<7x1xi1> to vector<7x32xi1>
    %213 = vector.broadcast %cst_62 : f32 to vector<7x32xf32>
    %214 = arith.select %212, %168, %213 : vector<7x32xi1>, vector<7x32xf32>
    %cst_63 = arith.constant dense<0xFF800000> : vector<32xf32>
    %215 = vector.multi_reduction <maximumf>, %214, %cst_63 [0] : vector<7x32xf32> to vector<32xf32>
    %216 = vector.shape_cast %215 : vector<32xf32> to vector<1x32xf32>
    %217 = vector.shape_cast %210 : vector<7x1xi1> to vector<7x1xi1>
    %218 = vector.broadcast %217 : vector<7x1xi1> to vector<7x32xi1>
    %219 = vector.shape_cast %216 : vector<1x32xf32> to vector<1x32xf32>
    %220 = vector.broadcast %219 : vector<1x32xf32> to vector<7x32xf32>
    %221 = arith.select %218, %220, %208 : vector<7x32xi1>, vector<7x32xf32>
    %c4_i32_64 = arith.constant 4 : i32
    %222 = vector.broadcast %c4_i32_64 : i32 to vector<7x1xi32>
    %223 = arith.cmpi eq, %159, %222 : vector<7x1xi32>
    %cst_65 = arith.constant -3.40282347E+38 : f32
    %224 = vector.shape_cast %223 : vector<7x1xi1> to vector<7x1xi1>
    %225 = vector.broadcast %224 : vector<7x1xi1> to vector<7x32xi1>
    %226 = vector.broadcast %cst_65 : f32 to vector<7x32xf32>
    %227 = arith.select %225, %168, %226 : vector<7x32xi1>, vector<7x32xf32>
    %cst_66 = arith.constant dense<0xFF800000> : vector<32xf32>
    %228 = vector.multi_reduction <maximumf>, %227, %cst_66 [0] : vector<7x32xf32> to vector<32xf32>
    %229 = vector.shape_cast %228 : vector<32xf32> to vector<1x32xf32>
    %230 = vector.shape_cast %223 : vector<7x1xi1> to vector<7x1xi1>
    %231 = vector.broadcast %230 : vector<7x1xi1> to vector<7x32xi1>
    %232 = vector.shape_cast %229 : vector<1x32xf32> to vector<1x32xf32>
    %233 = vector.broadcast %232 : vector<1x32xf32> to vector<7x32xf32>
    %234 = arith.select %231, %233, %221 : vector<7x32xi1>, vector<7x32xf32>
    %c5_i32_67 = arith.constant 5 : i32
    %235 = vector.broadcast %c5_i32_67 : i32 to vector<7x1xi32>
    %236 = arith.cmpi eq, %159, %235 : vector<7x1xi32>
    %cst_68 = arith.constant -3.40282347E+38 : f32
    %237 = vector.shape_cast %236 : vector<7x1xi1> to vector<7x1xi1>
    %238 = vector.broadcast %237 : vector<7x1xi1> to vector<7x32xi1>
    %239 = vector.broadcast %cst_68 : f32 to vector<7x32xf32>
    %240 = arith.select %238, %168, %239 : vector<7x32xi1>, vector<7x32xf32>
    %cst_69 = arith.constant dense<0xFF800000> : vector<32xf32>
    %241 = vector.multi_reduction <maximumf>, %240, %cst_69 [0] : vector<7x32xf32> to vector<32xf32>
    %242 = vector.shape_cast %241 : vector<32xf32> to vector<1x32xf32>
    %243 = vector.shape_cast %236 : vector<7x1xi1> to vector<7x1xi1>
    %244 = vector.broadcast %243 : vector<7x1xi1> to vector<7x32xi1>
    %245 = vector.shape_cast %242 : vector<1x32xf32> to vector<1x32xf32>
    %246 = vector.broadcast %245 : vector<1x32xf32> to vector<7x32xf32>
    %247 = arith.select %244, %246, %234 : vector<7x32xi1>, vector<7x32xf32>
    %c6_i32_70 = arith.constant 6 : i32
    %248 = vector.broadcast %c6_i32_70 : i32 to vector<7x1xi32>
    %249 = arith.cmpi eq, %159, %248 : vector<7x1xi32>
    %cst_71 = arith.constant -3.40282347E+38 : f32
    %250 = vector.shape_cast %249 : vector<7x1xi1> to vector<7x1xi1>
    %251 = vector.broadcast %250 : vector<7x1xi1> to vector<7x32xi1>
    %252 = vector.broadcast %cst_71 : f32 to vector<7x32xf32>
    %253 = arith.select %251, %168, %252 : vector<7x32xi1>, vector<7x32xf32>
    %cst_72 = arith.constant dense<0xFF800000> : vector<32xf32>
    %254 = vector.multi_reduction <maximumf>, %253, %cst_72 [0] : vector<7x32xf32> to vector<32xf32>
    %255 = vector.shape_cast %254 : vector<32xf32> to vector<1x32xf32>
    %256 = vector.shape_cast %249 : vector<7x1xi1> to vector<7x1xi1>
    %257 = vector.broadcast %256 : vector<7x1xi1> to vector<7x32xi1>
    %258 = vector.shape_cast %255 : vector<1x32xf32> to vector<1x32xf32>
    %259 = vector.broadcast %258 : vector<1x32xf32> to vector<7x32xf32>
    %260 = arith.select %257, %259, %247 : vector<7x32xi1>, vector<7x32xf32>
    %c7_i32_73 = arith.constant 7 : i32
    %261 = vector.broadcast %c7_i32_73 : i32 to vector<7x1xi32>
    %262 = arith.cmpi eq, %159, %261 : vector<7x1xi32>
    %cst_74 = arith.constant -3.40282347E+38 : f32
    %263 = vector.shape_cast %262 : vector<7x1xi1> to vector<7x1xi1>
    %264 = vector.broadcast %263 : vector<7x1xi1> to vector<7x32xi1>
    %265 = vector.broadcast %cst_74 : f32 to vector<7x32xf32>
    %266 = arith.select %264, %168, %265 : vector<7x32xi1>, vector<7x32xf32>
    %cst_75 = arith.constant dense<0xFF800000> : vector<32xf32>
    %267 = vector.multi_reduction <maximumf>, %266, %cst_75 [0] : vector<7x32xf32> to vector<32xf32>
    %268 = vector.shape_cast %267 : vector<32xf32> to vector<1x32xf32>
    %269 = vector.shape_cast %262 : vector<7x1xi1> to vector<7x1xi1>
    %270 = vector.broadcast %269 : vector<7x1xi1> to vector<7x32xi1>
    %271 = vector.shape_cast %268 : vector<1x32xf32> to vector<1x32xf32>
    %272 = vector.broadcast %271 : vector<1x32xf32> to vector<7x32xf32>
    %273 = arith.select %270, %272, %260 : vector<7x32xi1>, vector<7x32xf32>
    %274 = arith.subf %168, %273 : vector<7x32xf32>
    %275 = math.exp %274 : vector<7x32xf32>
    %cst_76 = arith.constant dense<0.000000e+00> : vector<8x32xf32>
    %276 = tpu.matmul %160, %275, %cst_76 {dimension_numbers = #tpu.dot_dimension_numbers<[1], [0], [0], [1], [0, 0, 1, 1], [], []>} : vector<8x7xf32>, vector<7x32xf32>, vector<8x32xf32> -> vector<8x32xf32>
    %277 = arith.mulf %275, %158 : vector<7x32xf32>
    %cst_77 = arith.constant dense<0.000000e+00> : vector<8x32xf32>
    %278 = tpu.matmul %160, %277, %cst_77 {dimension_numbers = #tpu.dot_dimension_numbers<[1], [0], [0], [1], [0, 0, 1, 1], [], []>} : vector<8x7xf32>, vector<7x32xf32>, vector<8x32xf32> -> vector<8x32xf32>
    %cst_78 = arith.constant 1.000000e+00 : f32
    %279 = vector.broadcast %cst_78 : f32 to vector<8x32xf32>
    %280 = arith.maximumf %276, %279 : vector<8x32xf32>
    %281 = tpu.reciprocal %280 {approx = true} : vector<8x32xf32> -> vector<8x32xf32>
    %282 = arith.mulf %278, %281 : vector<8x32xf32>
    %283 = arith.mulf %282, %282 : vector<8x32xf32>
    %cst_79 = arith.constant dense<0.000000e+00> : vector<8xf32>
    %284 = vector.multi_reduction <add>, %283, %cst_79 [1] : vector<8x32xf32> to vector<8xf32>
    %285 = vector.shape_cast %284 : vector<8xf32> to vector<8x1xf32>
    %cst_80 = arith.constant 1.000000e-24 : f32
    %286 = vector.broadcast %cst_80 : f32 to vector<8x1xf32>
    %287 = arith.maximumf %285, %286 : vector<8x1xf32>
    %288 = math.rsqrt %287 : vector<8x1xf32>
    %289 = vector.broadcast %288 : vector<8x1xf32> to vector<8x32xf32>
    %290 = arith.mulf %282, %289 : vector<8x32xf32>
    %c0_81 = arith.constant 0 : index
    %c0_82 = arith.constant 0 : index
    %291 = vector.load %arg7[%c0_81, %c0_82] : memref<31x32xf32, #tpu.memory_space<vmem>>, vector<31x32xf32>
    %c0_83 = arith.constant 0 : index
    %c0_84 = arith.constant 0 : index
    %292 = vector.load %arg8[%c0_83, %c0_84] : memref<31x1xi32, #tpu.memory_space<vmem>>, vector<31x1xi32>
    %c0_i32_85 = arith.constant 0 : i32
    %293 = vector.broadcast %c0_i32_85 : i32 to vector<31x1xi32>
    %294 = arith.cmpi eq, %292, %293 : vector<31x1xi32>
    %cst_86 = arith.constant 0.000000e+00 : f32
    %295 = vector.shape_cast %294 : vector<31x1xi1> to vector<31x1xi1>
    %296 = vector.broadcast %295 : vector<31x1xi1> to vector<31x32xi1>
    %297 = vector.broadcast %cst_86 : f32 to vector<31x32xf32>
    %298 = arith.select %296, %291, %297 : vector<31x32xi1>, vector<31x32xf32>
    %cst_87 = arith.constant dense<0xFF800000> : vector<32xf32>
    %299 = vector.multi_reduction <maximumf>, %298, %cst_87 [0] : vector<31x32xf32> to vector<32xf32>
    %300 = vector.shape_cast %299 : vector<32xf32> to vector<1x32xf32>
    %c1_i32_88 = arith.constant 1 : i32
    %301 = vector.broadcast %c1_i32_88 : i32 to vector<31x1xi32>
    %302 = arith.cmpi eq, %292, %301 : vector<31x1xi32>
    %cst_89 = arith.constant 0.000000e+00 : f32
    %303 = vector.shape_cast %302 : vector<31x1xi1> to vector<31x1xi1>
    %304 = vector.broadcast %303 : vector<31x1xi1> to vector<31x32xi1>
    %305 = vector.broadcast %cst_89 : f32 to vector<31x32xf32>
    %306 = arith.select %304, %291, %305 : vector<31x32xi1>, vector<31x32xf32>
    %cst_90 = arith.constant dense<0xFF800000> : vector<32xf32>
    %307 = vector.multi_reduction <maximumf>, %306, %cst_90 [0] : vector<31x32xf32> to vector<32xf32>
    %308 = vector.shape_cast %307 : vector<32xf32> to vector<1x32xf32>
    %c2_i32_91 = arith.constant 2 : i32
    %309 = vector.broadcast %c2_i32_91 : i32 to vector<31x1xi32>
    %310 = arith.cmpi eq, %292, %309 : vector<31x1xi32>
    %cst_92 = arith.constant 0.000000e+00 : f32
    %311 = vector.shape_cast %310 : vector<31x1xi1> to vector<31x1xi1>
    %312 = vector.broadcast %311 : vector<31x1xi1> to vector<31x32xi1>
    %313 = vector.broadcast %cst_92 : f32 to vector<31x32xf32>
    %314 = arith.select %312, %291, %313 : vector<31x32xi1>, vector<31x32xf32>
    %cst_93 = arith.constant dense<0xFF800000> : vector<32xf32>
    %315 = vector.multi_reduction <maximumf>, %314, %cst_93 [0] : vector<31x32xf32> to vector<32xf32>
    %316 = vector.shape_cast %315 : vector<32xf32> to vector<1x32xf32>
    %c3_i32_94 = arith.constant 3 : i32
    %317 = vector.broadcast %c3_i32_94 : i32 to vector<31x1xi32>
    %318 = arith.cmpi eq, %292, %317 : vector<31x1xi32>
    %cst_95 = arith.constant 0.000000e+00 : f32
    %319 = vector.shape_cast %318 : vector<31x1xi1> to vector<31x1xi1>
    %320 = vector.broadcast %319 : vector<31x1xi1> to vector<31x32xi1>
    %321 = vector.broadcast %cst_95 : f32 to vector<31x32xf32>
    %322 = arith.select %320, %291, %321 : vector<31x32xi1>, vector<31x32xf32>
    %cst_96 = arith.constant dense<0xFF800000> : vector<32xf32>
    %323 = vector.multi_reduction <maximumf>, %322, %cst_96 [0] : vector<31x32xf32> to vector<32xf32>
    %324 = vector.shape_cast %323 : vector<32xf32> to vector<1x32xf32>
    %c4_i32_97 = arith.constant 4 : i32
    %325 = vector.broadcast %c4_i32_97 : i32 to vector<31x1xi32>
    %326 = arith.cmpi eq, %292, %325 : vector<31x1xi32>
    %cst_98 = arith.constant 0.000000e+00 : f32
    %327 = vector.shape_cast %326 : vector<31x1xi1> to vector<31x1xi1>
    %328 = vector.broadcast %327 : vector<31x1xi1> to vector<31x32xi1>
    %329 = vector.broadcast %cst_98 : f32 to vector<31x32xf32>
    %330 = arith.select %328, %291, %329 : vector<31x32xi1>, vector<31x32xf32>
    %cst_99 = arith.constant dense<0xFF800000> : vector<32xf32>
    %331 = vector.multi_reduction <maximumf>, %330, %cst_99 [0] : vector<31x32xf32> to vector<32xf32>
    %332 = vector.shape_cast %331 : vector<32xf32> to vector<1x32xf32>
    %c5_i32_100 = arith.constant 5 : i32
    %333 = vector.broadcast %c5_i32_100 : i32 to vector<31x1xi32>
    %334 = arith.cmpi eq, %292, %333 : vector<31x1xi32>
    %cst_101 = arith.constant 0.000000e+00 : f32
    %335 = vector.shape_cast %334 : vector<31x1xi1> to vector<31x1xi1>
    %336 = vector.broadcast %335 : vector<31x1xi1> to vector<31x32xi1>
    %337 = vector.broadcast %cst_101 : f32 to vector<31x32xf32>
    %338 = arith.select %336, %291, %337 : vector<31x32xi1>, vector<31x32xf32>
    %cst_102 = arith.constant dense<0xFF800000> : vector<32xf32>
    %339 = vector.multi_reduction <maximumf>, %338, %cst_102 [0] : vector<31x32xf32> to vector<32xf32>
    %340 = vector.shape_cast %339 : vector<32xf32> to vector<1x32xf32>
    %c6_i32_103 = arith.constant 6 : i32
    %341 = vector.broadcast %c6_i32_103 : i32 to vector<31x1xi32>
    %342 = arith.cmpi eq, %292, %341 : vector<31x1xi32>
    %cst_104 = arith.constant 0.000000e+00 : f32
    %343 = vector.shape_cast %342 : vector<31x1xi1> to vector<31x1xi1>
    %344 = vector.broadcast %343 : vector<31x1xi1> to vector<31x32xi1>
    %345 = vector.broadcast %cst_104 : f32 to vector<31x32xf32>
    %346 = arith.select %344, %291, %345 : vector<31x32xi1>, vector<31x32xf32>
    %cst_105 = arith.constant dense<0xFF800000> : vector<32xf32>
    %347 = vector.multi_reduction <maximumf>, %346, %cst_105 [0] : vector<31x32xf32> to vector<32xf32>
    %348 = vector.shape_cast %347 : vector<32xf32> to vector<1x32xf32>
    %c7_i32_106 = arith.constant 7 : i32
    %349 = vector.broadcast %c7_i32_106 : i32 to vector<31x1xi32>
    %350 = arith.cmpi eq, %292, %349 : vector<31x1xi32>
    %cst_107 = arith.constant 0.000000e+00 : f32
    %351 = vector.shape_cast %350 : vector<31x1xi1> to vector<31x1xi1>
    %352 = vector.broadcast %351 : vector<31x1xi1> to vector<31x32xi1>
    %353 = vector.broadcast %cst_107 : f32 to vector<31x32xf32>
    %354 = arith.select %352, %291, %353 : vector<31x32xi1>, vector<31x32xf32>
    %cst_108 = arith.constant dense<0xFF800000> : vector<32xf32>
    %355 = vector.multi_reduction <maximumf>, %354, %cst_108 [0] : vector<31x32xf32> to vector<32xf32>
    %356 = vector.shape_cast %355 : vector<32xf32> to vector<1x32xf32>
    %357 = tpu.concatenate %300, %308, %316, %324, %332, %340, %348, %356 in 0 : vector<1x32xf32>, vector<1x32xf32>, vector<1x32xf32>, vector<1x32xf32>, vector<1x32xf32>, vector<1x32xf32>, vector<1x32xf32>, vector<1x32xf32> -> vector<8x32xf32>
    %cst_109 = arith.constant 0.000000e+00 : f32
    %358 = vector.broadcast %cst_109 : f32 to vector<8x32xf32>
    %359 = arith.maximumf %357, %358 : vector<8x32xf32>
    %360 = tpu.concatenate %290, %359 in 1 : vector<8x32xf32>, vector<8x32xf32> -> vector<8x64xf32>
    %c0_110 = arith.constant 0 : index
    %c0_111 = arith.constant 0 : index
    %361 = vector.load %arg14[%c0_110, %c0_111] : memref<8x64xf32, #tpu.memory_space<vmem>>, vector<8x64xf32>
    tpu.vector_store %arg14[%c0_110, %c0_111], %360 {strides = array<i32>} : memref<8x64xf32, #tpu.memory_space<vmem>>, vector<8x64xf32>,
    return
  }
}

</mosaic_0001>

<bundles_post_ra>
// kernel: tpu_custom_call.1
= control target key start
LH: loop header
LB: loop body
LE: loop exit
PB: predicated region body
PF: predicated region fallthrough
CT: control target
= control target key end

     0   :  { %19 = vsyncpa [#allocation5], 0  ;;  %s2284_s0 = inlined_call_operand.vmem [shape: f32[4], index: 0, kind: input, shape index: {}]   ;;  %s2285_s1 = inlined_call_operand.hbm [shape: f32[24,32], index: 1, kind: input, shape index: {}]   ;;  %s2286_s2 = inlined_call_operand.vmem [shape: s32[24,1], index: 2, kind: input, shape index: {}]   ;;  %s2287_s3 = inlined_call_operand.hbm [shape: f32[8,24], index: 3, kind: input, shape index: {}]   ;;  %s2288_s4 = inlined_call_operand.hbm [shape: f32[7,8], index: 4, kind: input, shape index: {}]   ;;  %s2289_s5 = inlined_call_operand.vmem [shape: s32[7,1], index: 5, kind: input, shape index: {}]   ;;  %s2290_s6 = inlined_call_operand.hbm [shape: f32[8,7], index: 6, kind: input, shape index: {}]   ;;  %s2291_s7 = inlined_call_operand.vmem [shape: f32[31,32], index: 7, kind: input, shape index: {}]   ;;  %s2292_s8 = inlined_call_operand.vmem [shape: s32[31,1], index: 8, kind: input, shape index: {}]   ;;  %s2293_s9 = inlined_call_operand.vmem [shape: f32[1,8], index: 9, kind: input, shape index: {}]   ;;  %s2294_s10 = inlined_call_operand.vmem [shape: f32[32,32], index: 10, kind: input, shape index: {}]   ;;  %s2295_s11 = inlined_call_operand.vmem [shape: f32[1,32], index: 11, kind: input, shape index: {}]   ;;  %s2296_s12 = inlined_call_operand.hbm [shape: f32[32,32], index: 12, kind: input, shape index: {}]   ;;  %s2297_s13 = inlined_call_operand.vmem [shape: f32[1,32], index: 13, kind: input, shape index: {}]   ;;  %s2298_s14 = inlined_call_operand.hbm [shape: f32[8,64], index: 14, kind: output, shape index: {}]  }
   0x1   :  { %20 = vsyncpa [#allocation3], 0 }
   0x2   :  { %21 = vsyncpa [#allocation8], 0 }
   0x3   :  { %22 = vsyncpa [#allocation11], 0  ;;  %s53_s15 = sshll.u32 %s2287_s3, 4  ;;  %s54_s15 = int_to_ptr.hbm [resolvable:$true] %s53_s15 }
   0x4   :  { %23 = vsyncpa [#allocation4], 0  ;;  %s1466_s16 = smov [#allocation7]   ;;  %s77_s20 = sshll.u32 %s2290_s6, 4  ;;  %s78_s20 = int_to_ptr.hbm [resolvable:$true] %s77_s20 }
   0x5   :  { %s55_s17 = sshll.u32 %s1466_s16, 4  ;;  %s1467_s21 = smov [#allocation10]   ;;  %s56_s17 = int_to_ptr.vmem [resolvable:$true] %s55_s17 }
   0x6   :  { %58 = dma.hbm_to_vmem [thread:$0]  %s54_s15, 128, %s56_s17, [#allocation8]  }
   0x7   :  { %s79_s22 = sshll.u32 %s1467_s21, 4  ;;  %s29_s25 = sshll.u32 %s2284_s0, 4  ;;  %s80_s22 = int_to_ptr.vmem [resolvable:$true] %s79_s22  ;;  %s30_s25 = int_to_ptr.vmem [resolvable:$true] %s29_s25 }
   0x8   :  { %82 = dma.hbm_to_vmem [thread:$0]  %s78_s20, 128, %s80_s22, [#allocation11]  }
   0x9   :  { %s37_s27 = sshll.u32 %s2285_s1, 4  ;;  %s1468_s28 = smov [#allocation2]   ;;  %s38_s27 = int_to_ptr.hbm [resolvable:$true] %s37_s27 }
   0xa   :  { %32 = dma.vmem_to_smem %s30_s25, 16, %s1468_s28, [#allocation5]  }
   0xb   :  { %s1469_s29 = smov [#allocation6]   ;;  %s1470_s30 = smov 128  }
   0xc   :  { %s39_s6 = sshll.u32 %s1469_s29, 4  ;;  %s1471_s15 = smov 8   ;;  %s40_s6 = int_to_ptr.vmem [resolvable:$true] %s39_s6 }
   0xd   :  { %45 = dma.hbm_to_vmem [thread:$0]  %s38_s27, 384, %s40_s6, [#allocation3], %s1470_s30, %s1470_s30, %s1471_s15  }
   0xe   :  { %s64_s0 = sshll.u32 %s2288_s4, 4  ;;  %s1472_s18 = smov [#allocation9]   ;;  %s65_s0 = int_to_ptr.hbm [resolvable:$true] %s64_s0 }
   0xf   :  { %s66_s19 = sshll.u32 %s1472_s18, 4  ;;  %s97_s1 = sshll.u32 %s2296_s12, 4  ;;  %s67_s19 = int_to_ptr.vmem [resolvable:$true] %s66_s19  ;;  %s98_s1 = int_to_ptr.hbm [resolvable:$true] %s97_s1 }
  0x10   :  { %69 = dma.hbm_to_vmem [thread:$0]  %s65_s0, 128, %s67_s19, [#allocation8]  }
  0x11   :  { %s1473_s22 = smov [#allocation12]  }
  0x12   :  { %s99_s23 = sshll.u32 %s1473_s22, 4  ;;  %s100_s23 = int_to_ptr.vmem [resolvable:$true] %s99_s23 }
  0x13   :  { %105 = dma.hbm_to_vmem [thread:$0]  %s98_s1, 512, %s100_s23, [#allocation11], %s1470_s30, %s1470_s30, %s1471_s15  }
  0x14   :  { %1456 = dma.done.wait [#allocation5], 16  }
  0x15   :  { %1457 = vsyncadd [#allocation5], 4294967280 }
  0x16   :  { %1458 = dma.done.wait [#allocation3], 384  }
  0x17   :  { %1459 = vsyncadd [#allocation3], 4294966912 }
  0x18   :  { %1460 = dma.done.wait [#allocation8], 256  }
  0x19   :  { %1461 = vsyncadd [#allocation8], 4294967040 }
  0x1a   :  { %1462 = dma.done.wait [#allocation11], 640  }
  0x1b   :  { %1463 = vsyncadd [#allocation11], 4294966656 }
  0x1c   :  { %132 = sfence }
  0x1d   :  { %v1573_v0 = vld [vmem:[%s2294_s10 + $0x18] sm:$0xff]  ;;  %v1578_v1 = vld [vmem:[%s2286_s2 + $0x10] sm:$0xff]  ;;  %v1583_v2 = vld [vmem:[%s2286_s2] sm:$0xff]  ;;  %v2311_v3 = vmov 0   ;;  %vm153_vm4 = vcmask 261120   ;;  %s1254_s19 = sld [smem:[#allocation2 + $0x1]] }
  0x1e   :  { %2321 = vst [vmem:[#allocation19_spill] sm:$0xff] %v1573_v0  ;;  %175 = vmatpush.msra.mxu0 %v1573_v0  ;;  %1277 = vset.pattern.permute.xlu2 %v2311_v3  ;;  %vm232_vm0 = vcmp.eq.s32.totalorder %v1578_v1, 0  ;;  %vm230_vm1 = vcmp.eq.s32.totalorder %v1583_v2, 0  ;;  %v1592_v4 = vld [vmem:[%s2294_s10 + $0x10] sm:$0xff]  ;;  %v1600_v7 = vld [vmem:[%s2286_s2 + $0x8] sm:$0xff]  ;;  %v1612_v9 = vld [vmem:[%s2294_s10] sm:$0xff] }
  0x1f   :  { %2322 = vst [vmem:[#allocation20_spill] sm:$0xff] %v1592_v4  ;;  %1275 = vset.pattern.permute.xlu0 %v2311_v3  ;;  %v235_v5 = vsel %vm232_vm0, 1, %v2311_v3  ;;  %v233_v6 = vsel %vm230_vm1, 1, %v2311_v3  ;;  %1276 = vset.pattern.permute.xlu1 %v2311_v3  ;;  %v1606_v8 = vld [vmem:[%s2294_s10 + $0x8] sm:$0xff]  ;;  %vm300_vm2 = vcmp.eq.s32.totalorder %v1583_v2, 2  ;;  %vm231_vm3 = vcmp.eq.s32.totalorder %v1600_v7, 0 }
  0x20   :  { %243 = vperm.xlu2 %1277, %v235_v5   ;;  %237 = vperm.xlu0 %1275, %v233_v6   ;;  %2323 = vst [vmem:[#allocation21_spill] sm:$0xff] %v1606_v8  ;;  %v1617_v10 = vld [vmem:[#allocation6] sm:$0xff]  ;;  %v303_v11 = vsel %vm300_vm2, 1, %v2311_v3  ;;  %v234_v12 = vsel %vm231_vm3, 1, %v2311_v3  ;;  %vm335_vm5 = vcmp.eq.s32.totalorder %v1583_v2, 3  ;;  %vm301_vm6 = vcmp.eq.s32.totalorder %v1600_v7, 2 }
  0x21   :  { %176 = vmatpush.msra.mxu0 %v1592_v4  ;;  %2324 = vst [vmem:[#allocation22_spill] sm:$0xff] %v1612_v9  ;;  %v1626_v13 = vld [vmem:[#allocation6 + $0x8] sm:$0xff]  ;;  %v338_v14 = vsel %vm335_vm5, 1, %v2311_v3  ;;  %v304_v15 = vsel %vm301_vm6, 1, %v2311_v3  ;;  %vm370_vm7 = vcmp.eq.s32.totalorder %v1583_v2, 4  ;;  %vm336_vm8 = vcmp.eq.s32.totalorder %v1600_v7, 3 }
  0x22   :  { %2325 = vst [vmem:[#allocation23_spill] sm:$0xff] %v1617_v10  ;;  %v1634_v16 = vld [vmem:[#allocation6 + $0x10] sm:$0xff]  ;;  %v373_v17 = vsel %vm370_vm7, 1, %v2311_v3  ;;  %v339_v18 = vsel %vm336_vm8, 1, %v2311_v3  ;;  %vm265_vm9 = vcmp.eq.s32.totalorder %v1583_v2, 1  ;;  %vm405_vm10 = vcmp.eq.s32.totalorder %v1583_v2, 5 }
  0x23   :  { %177 = vmatpush.msra.mxu0 %v1606_v8  ;;  %2326 = vst [vmem:[#allocation24_spill] sm:$0xff] %v1626_v13  ;;  %v268_v19 = vsel %vm265_vm9, 1, %v2311_v3  ;;  %vm371_vm11 = vcmp.eq.s32.totalorder %v1600_v7, 4  ;;  %v408_v20 = vsel %vm405_vm10, 1, %v2311_v3  ;;  %vm266_vm12 = vcmp.eq.s32.totalorder %v1600_v7, 1  ;;  %s1256_s20 = sld [smem:[#allocation2 + $0x3]] }
  0x24   :  { %272 = vperm.xlu1 %1276, %v268_v19   ;;  %v374_v21 = vsel %vm371_vm11, 1, %v2311_v3  ;;  %v269_v22 = vsel %vm266_vm12, 1, %v2311_v3  ;;  %vm440_vm13 = vcmp.eq.s32.totalorder %v1583_v2, 6  ;;  %vm406_vm14 = vcmp.eq.s32.totalorder %v1600_v7, 5  ;;  %v1667_v31 = vld [vmem:[%s2289_s5] sm:$0x7f] }
  0x25   :  { %178 = vmatpush.msra.mxu0 %v1612_v9  ;;  %v443_v23 = vsel %vm440_vm13, 1, %v2311_v3  ;;  %v409_v24 = vsel %vm406_vm14, 1, %v2311_v3  ;;  %vm267_vm15 = vcmp.eq.s32.totalorder %v1578_v1, 1  ;;  %vm475_vm0 = vcmp.eq.s32.totalorder %v1583_v2, 7  ;;  %v573_v34 = vld [vmem:[%s2293_s9] sm:$0x1] }
  0x26   :  { %1246 = vmatmul.msk.f32.vlgmr.msra.gmra.mxu0 %vm153_vm4, %v1617_v10  ;;  %v270_v25 = vsel %vm267_vm15, 1, %v2311_v3  ;;  %vm441_vm1 = vcmp.eq.s32.totalorder %v1600_v7, 6  ;;  %v478_v26 = vsel %vm475_vm0, 1, %v2311_v3  ;;  %vm302_vm2 = vcmp.eq.s32.totalorder %v1578_v1, 2  ;;  %s569_s5 = sld [smem:[#allocation2]]  ;;  %v1694_v53 = vld [vmem:[#allocation12 + $0x18] sm:$0xff] }
  0x27   :  { %v444_v27 = vsel %vm441_vm1, 1, %v2311_v3  ;;  %v305_v28 = vsel %vm302_vm2, 1, %v2311_v3  ;;  %vm477_vm3 = vcmp.eq.s32.totalorder %v1578_v1, 7  ;;  %vm476_vm5 = vcmp.eq.s32.totalorder %v1600_v7, 7  ;;  %s1255_s9 = sld [smem:[#allocation2 + $0x2]]  ;;  %2327 = vst [vmem:[#allocation25_spill] sm:$0xff] %v1694_v53  ;;  %216 = vmatpush.msra.mxu1 %v1694_v53 }
  0x28   :  { %307 = vperm.xlu2 %1277, %v303_v11   ;;  %240 = vperm.xlu0 %1275, %v234_v12   ;;  %v480_v29 = vsel %vm477_vm3, 1, %v2311_v3  ;;  %v479_v30 = vsel %vm476_vm5, 1, %v2311_v3  ;;  %vm337_vm6 = vcmp.eq.s32.totalorder %v1578_v1, 3  ;;  %vm674_vm7 = vcmp.eq.s32.totalorder %v1667_v31, 0  ;;  %v1698_v54 = vld [vmem:[#allocation12 + $0x10] sm:$0xff]  ;;  %v1701_v55 = vld [vmem:[#allocation12 + $0x8] sm:$0xff] }
  0x29   :  { %v340_v32 = vsel %vm337_vm6, 1, %v2311_v3  ;;  %v675_v33 = vsel %vm674_vm7, 1, %v2311_v3  ;;  %vm372_vm8 = vcmp.eq.s32.totalorder %v1578_v1, 4  ;;  %vm690_vm9 = vcmp.eq.s32.totalorder %v1667_v31, 1  ;;  %2328 = vst [vmem:[#allocation26_spill] sm:$0xff] %v1698_v54  ;;  %217 = vmatpush.msra.mxu1 %v1698_v54  ;;  %v1705_v57 = vld [vmem:[#allocation12] sm:$0xff] }
  0x2a   :  { %v375_v35 = vsel %vm372_vm8, 1, %v2311_v3  ;;  %1280 = vrcp.f32 %v573_v34  ;;  %v691_v36 = vsel %vm690_vm9, 1, %v2311_v3  ;;  %vm407_vm10 = vcmp.eq.s32.totalorder %v1578_v1, 5  ;;  %2329 = vst [vmem:[#allocation27_spill] sm:$0xff] %v1701_v55  ;;  %v1710_v58 = vld [vmem:[%s2292_s8 + $0x18] sm:$0x7f] }
  0x2b   :  { %v410_v39 = vsel %vm407_vm10, 1, %v2311_v3  ;;  %vm705_vm11 = vcmp.eq.s32.totalorder %v1667_v31, 2  ;;  %v577_v41 = vstv %s1254_s19  ;;  %vm442_vm12 = vcmp.eq.s32.totalorder %v1578_v1, 6  ;;  %218 = vmatpush.msra.mxu1 %v1701_v55  ;;  %2330 = vst [vmem:[#allocation28_spill] sm:$0xff] %v1705_v57  ;;  %v1718_v60 = vld [vmem:[%s2292_s8 + $0x10] sm:$0xff]  ;;  %v1727_v63 = vld [vmem:[%s2292_s8] sm:$0xff] }
  0x2c   :  { %275 = vperm.xlu1 %1276, %v269_v22   ;;  %v575_v38 = vstv %s569_s5  ;;  %v706_v42 = vsel %vm705_vm11, 1, %v2311_v3  ;;  %v445_v44 = vsel %vm442_vm12, 1, %v2311_v3  ;;  %vm720_vm13 = vcmp.eq.s32.totalorder %v1667_v31, 3  ;;  %v1732_v1 = vld [vmem:[%s2292_s8 + $0x8] sm:$0xff]  ;;  %v1741_v6 = vld [vmem:[%s2295_s11] ss:$0 sm:$0xff] }
  0x2d   :  { %v580_v46 = vstv %s1255_s9  ;;  %v721_v47 = vsel %vm720_vm13, 1, %v2311_v3  ;;  %v582_v49 = vstv %s1256_s20  ;;  %vm735_vm14 = vcmp.eq.s32.totalorder %v1667_v31, 4  ;;  %219 = vmatpush.msra.mxu1 %v1705_v57  ;;  %2331 = vst [vmem:[#allocation29_spill] sm:$0xff] %v1741_v6  ;;  %s1476_s17 = smov [#allocation13]   ;;  %s1233_s18 = sshll.u32 %s2298_s14, 4  ;;  %s1234_s18 = int_to_ptr.hbm [resolvable:$true] %s1233_s18 }
  0x2e   :  { %1247 = vmatmul.msk.f32.gmra.mxu0 %vm153_vm4, %v1626_v13  ;;  %vm584_vm15 = vcmask 57344   ;;  %v736_v51 = vsel %vm735_vm14, 1, %v2311_v3  ;;  %vm750_vm0 = vcmp.eq.s32.totalorder %v1667_v31, 5  ;;  %vm921_vm1 = vcmp.eq.s32.totalorder %v1710_v58, 1  ;;  %s1231_s2 = sshll.u32 %s1476_s17, 4  ;;  %s1232_s2 = int_to_ptr.vmem [resolvable:$true] %s1231_s2 }
  0x2f   :  { %v751_v56 = vsel %vm750_vm0, 1, %v2311_v3  ;;  %v925_v59 = vsel %vm921_vm1, 1, %v2311_v3  ;;  %vm765_vm2 = vcmp.eq.s32.totalorder %v1667_v31, 6  ;;  %vm1002_vm3 = vcmp.eq.s32.totalorder %v1718_v60, 3 }
  0x30   :  { %342 = vperm.xlu2 %1277, %v338_v14   ;;  %310 = vperm.xlu0 %1275, %v304_v15   ;;  %v1281_v37 = vpop.eup %1280  ;;  %v766_v61 = vsel %vm765_vm2, 1, %v2311_v3  ;;  %v1006_v62 = vsel %vm1002_vm3, 1, %v2311_v3  ;;  %vm877_vm5 = vcmp.eq.s32.totalorder %v1727_v63, 0  ;;  %vm1042_vm6 = vcmp.eq.s32.totalorder %v1732_v1, 4 }
  0x31   :  { %v576_v40 = vmul.f32 %v1281_v37, %v575_v38  ;;  %v881_v2 = vsel %vm877_vm5, 1, %v2311_v3  ;;  %v1046_v5 = vsel %vm1042_vm6, 1, %v2311_v3  ;;  %vm879_vm7 = vcmp.eq.s32.totalorder %v1718_v60, 0 }
  0x32   :  { %vm1082_vm8 = vcmp.eq.s32.totalorder %v1727_v63, 5  ;;  %v883_v11 = vsel %vm879_vm7, 1, %v2311_v3  ;;  %vm918_vm9 = vcmp.eq.s32.totalorder %v1727_v63, 1  ;;  %vm1085_vm10 = vcmp.eq.s32.totalorder %v1710_v58, 5 }
  0x33   :  { %v578_v43 = vadd.f32 %v577_v41, %v576_v40  ;;  %v1086_v14 = vsel %vm1082_vm8, 1, %v2311_v3  ;;  %v922_v19 = vsel %vm918_vm9, 1, %v2311_v3  ;;  %vm920_vm11 = vcmp.eq.s32.totalorder %v1718_v60, 1 }
  0x34   :  { %278 = vperm.xlu1 %1276, %v270_v25   ;;  %vm1125_vm12 = vcmp.eq.s32.totalorder %v1718_v60, 6  ;;  %v924_v25 = vsel %vm920_vm11, 1, %v2311_v3  ;;  %vm960_vm13 = vcmp.eq.s32.totalorder %v1732_v1, 2  ;;  %vm1165_vm14 = vcmp.eq.s32.totalorder %v1732_v1, 7 }
  0x35   :  { %v579_v45 = vmax.f32 %v578_v43, 0.0  ;;  %vm962_vm0 = vcmp.eq.s32.totalorder %v1710_v58, 2  ;;  %vm1001_vm1 = vcmp.eq.s32.totalorder %v1732_v1, 3  ;;  %vm1041_vm2 = vcmp.eq.s32.totalorder %v1727_v63, 4 }
  0x36   :  { %1248 = vmatmul.msk.f32.gmra.mxu0 %vm153_vm4, %v1634_v16  ;;  %v1045_v37 = vsel %vm1041_vm2, 1, %v2311_v3  ;;  %vm1044_vm3 = vcmp.eq.s32.totalorder %v1710_v58, 4  ;;  %vm1084_vm5 = vcmp.eq.s32.totalorder %v1718_v60, 5  ;;  %vm1124_vm6 = vcmp.eq.s32.totalorder %v1732_v1, 6 }
  0x37   :  { %v581_v48 = vmul.f32 %v580_v46, %v579_v45  ;;  %v1088_v41 = vsel %vm1084_vm5, 1, %v2311_v3  ;;  %vm1164_vm7 = vcmp.eq.s32.totalorder %v1727_v63, 7  ;;  %vm1167_vm8 = vcmp.eq.s32.totalorder %v1710_v58, 7 }
  0x38   :  { %377 = vperm.xlu2 %1277, %v373_v17   ;;  %345 = vperm.xlu0 %1275, %v339_v18   ;;  %v1168_v46 = vsel %vm1164_vm7, 1, %v2311_v3  ;;  %vm780_vm9 = vcmp.eq.s32.totalorder %v1667_v31, 7  ;;  %vm959_vm7 = vcmp.eq.s32.totalorder %v1727_v63, 2 }
  0x39   :  { %v1689_v50 = vadd.f32 %v582_v49, %v581_v48 }
  0x3b   :  { %v585_v52 = vsel %vm584_vm15, %v1689_v50, -inf }
  0x3c   :  { %313 = vperm.xlu1 %1276, %v305_v28  }
  0x40   :  { %412 = vperm.xlu2 %1277, %v408_v20   ;;  %380 = vperm.xlu0 %1275, %v374_v21   ;;  %v1089_v21 = vsel %vm1085_vm10, 1, %v2311_v3  ;;  %vm880_vm10 = vcmp.eq.s32.totalorder %v1710_v58, 0 }
  0x44   :  { %348 = vperm.xlu1 %1276, %v340_v32   ;;  %v1169_v32 = vsel %vm1165_vm14, 1, %v2311_v3 }
  0x48   :  { %447 = vperm.xlu2 %1277, %v443_v23   ;;  %415 = vperm.xlu0 %1275, %v409_v24  }
  0x4c   :  { %383 = vperm.xlu1 %1276, %v375_v35   ;;  %v1005_v35 = vsel %vm1001_vm1, 1, %v2311_v3 }
  0x50   :  { %482 = vperm.xlu2 %1277, %v478_v26   ;;  %450 = vperm.xlu0 %1275, %v444_v27   ;;  %v1129_v27 = vsel %vm1125_vm12, 1, %v2311_v3 }
  0x54   :  { %418 = vperm.xlu1 %1276, %v410_v39   ;;  %v1048_v39 = vsel %vm1044_vm3, 1, %v2311_v3 }
  0x58   :  { %488 = vperm.xlu2 %1277, %v480_v29   ;;  %485 = vperm.xlu0 %1275, %v479_v30   ;;  %v964_v30 = vsel %vm960_vm13, 1, %v2311_v3 }
  0x5c   :  { %453 = vperm.xlu1 %1276, %v445_v44   ;;  %v1128_v44 = vsel %vm1124_vm6, 1, %v2311_v3  ;;  %vm919_vm6 = vcmp.eq.s32.totalorder %v1732_v1, 1 }
  0x60   :  { %677 = vperm.xlu2 %1277, %v675_v33   ;;  %v966_v33 = vsel %vm962_vm0, 1, %v2311_v3 }
  0x68   :  { %693 = vperm.xlu2 %1277, %v691_v36  }
  0x70   :  { %708 = vperm.xlu2 %1277, %v706_v42  }
  0x78   :  { %723 = vperm.xlu2 %1277, %v721_v47  }
  0x7a   :  { %v1796_v45 = vpop.permute.xlu2 %243 }
  0x7b   :  { %vm247_vm14 = vcmp.eq.s32.totalorder %v1796_v45, 1 }
  0x80   :  { %738 = vperm.xlu2 %1277, %v736_v51  }
  0x82   :  { %586 = vmax.xlane.f32.xlu0 %v585_v52  ;;  %v1171_v52 = vsel %vm1167_vm8, 1, %v2311_v3 }
  0x88   :  { %753 = vperm.xlu2 %1277, %v751_v56   ;;  %v1804_v56 = vpop.permute.xlu2 %307 }
  0x89   :  { %vm2300_vm11 = vcmp.eq.s32.totalorder %v1804_v56, 1 }
  0x90   :  { %936 = vperm.xlu2 %1277, %v925_v59  }
  0x92   :  { %v1748_v15 = vpop.permute.xlu0 %237 }
  0x93   :  { %vm2299_vm1 = vcmp.eq.s32.totalorder %v1748_v15, 1 }
  0x96   :  { %768 = vperm.xlu0 %1275, %v766_v61   ;;  %v1790_v42 = vpop.permute.xlu1 %272 }
  0x97   :  { %vm2301_vm5 = vcmp.eq.s32.totalorder %v1790_v42, 1 }
  0x98   :  { %1015 = vperm.xlu2 %1277, %v1006_v62  }
  0x9a   :  { %v1756_v23 = vpop.permute.xlu0 %240 }
  0x9b   :  { %vm2304_vm2 = vcmp.eq.s32.totalorder %v1756_v23, 1 }
  0x9e   :  { %886 = vperm.xlu0 %1275, %v881_v2   ;;  %v1799_v47 = vpop.permute.xlu1 %275  ;;  %v1812_v2 = vpop.permute.xlu2 %342 }
  0x9f   :  { %vm2305_vm12 = vcmp.eq.s32.totalorder %v1812_v2, 1 }
  0xa0   :  { %1053 = vperm.xlu2 %1277, %v1046_v5  }
  0xa2   :  { %v1766_v29 = vpop.permute.xlu0 %310 }
  0xa3   :  { %v180_v7 = vpop.f32.mrf.mxu0  ;;  %vm2303_vm3 = vcmp.eq.s32.totalorder %v1766_v29, 1 }
  0xa4   :  { %v181_v12 = vadd.f32 %v1741_v6, %v180_v7 }
  0xa6   :  { %v189_v17 = vmax.f32 %v181_v12, 0.0  ;;  %892 = vperm.xlu0 %1275, %v883_v11   ;;  %v1806_v59 = vpop.permute.xlu1 %278  ;;  %v1816_v5 = vpop.permute.xlu2 %377  ;;  %v781_v11 = vsel %vm780_vm9, 1, %v2311_v3  ;;  %vm2302_vm9 = vcmp.eq.s32.totalorder %v1799_v47, 1 }
  0xa7   :  { %vm282_vm8 = vcmp.eq.s32.totalorder %v1806_v59, 1 }
  0xa8   :  { %1249 = vmatmul.msk.f32.vlgmr.msra.gmra.mxu1 %vm153_vm4, %v189_v17  ;;  %1091 = vperm.xlu2 %1277, %v1086_v14  }
  0xaa   :  { %v1773_v34 = vpop.permute.xlu0 %345 }
  0xab   :  { %v183_v18 = vpop.f32.mrf.mxu0 }
  0xac   :  { %v184_v20 = vadd.f32 %v1741_v6, %v183_v18 }
  0xae   :  { %v190_v22 = vmax.f32 %v184_v20, 0.0  ;;  %927 = vperm.xlu0 %1275, %v922_v19   ;;  %v1822_v12 = vpop.permute.xlu2 %412  ;;  %v1833_v19 = vld [vmem:[%s2297_s13] ss:$0 sm:$0xff] }
  0xaf   :  { %2333 = vst [vmem:[#allocation31_spill] sm:$0xff] %v1833_v19 }
  0xb0   :  { %1250 = vmatmul.msk.f32.gmra.mxu1 %vm153_vm4, %v190_v22  ;;  %1100 = vperm.xlu2 %1277, %v1089_v21   ;;  %v884_v21 = vsel %vm880_vm10, 1, %v2311_v3 }
  0xb2   :  { %v1777_v36 = vpop.permute.xlu0 %380 }
  0xb3   :  { %v186_v24 = vpop.f32.mrf.mxu0  ;;  %vm386_vm10 = vcmp.eq.s32.totalorder %v1777_v36, 1 }
  0xb4   :  { %v187_v26 = vadd.f32 %v1741_v6, %v186_v24 }
  0xb6   :  { %v191_v28 = vmax.f32 %v187_v26, 0.0  ;;  %933 = vperm.xlu0 %1275, %v924_v25   ;;  %v1828_v18 = vpop.permute.xlu2 %447 }
  0xb8   :  { %1251 = vmatmul.msk.f32.gmra.mxu1 %vm153_vm4, %v191_v28  ;;  %1138 = vperm.xlu2 %1277, %v1129_v27  }
  0xba   :  { %v1781_v38 = vpop.permute.xlu0 %415 }
  0xbb   :  { %vm421_vm0 = vcmp.eq.s32.totalorder %v1781_v38, 1 }
  0xbe   :  { %971 = vperm.xlu0 %1275, %v964_v30   ;;  %v1868_v28 = vpop.permute.xlu2 %482  ;;  %v923_v30 = vsel %vm919_vm6, 1, %v2311_v3  ;;  %vm1000_vm6 = vcmp.eq.s32.totalorder %v1727_v63, 3 }
  0xc0   :  { %1176 = vperm.xlu2 %1277, %v1169_v32   ;;  %v963_v32 = vsel %vm959_vm7, 1, %v2311_v3 }
  0xc2   :  { %v1786_v40 = vpop.permute.xlu0 %450 }
  0xc6   :  { %977 = vperm.xlu0 %1275, %v966_v33  }
  0xca   :  { %v1792_v43 = vpop.permute.xlu0 %485 }
  0xce   :  { %1012 = vperm.xlu0 %1275, %v1005_v35  }
  0xd6   :  { %1050 = vperm.xlu0 %1275, %v1045_v37  }
  0xde   :  { %1059 = vperm.xlu0 %1275, %v1048_v39  }
  0xe6   :  { %1097 = vperm.xlu0 %1275, %v1088_v41  }
  0xee   :  { %1135 = vperm.xlu0 %1275, %v1128_v44  }
  0xf5   :  { %v587_v48 = vpop.xlane.xlu0 %586 }
  0xf6   :  { %v588_v49 = vsub.f32 %v1689_v50, %v587_v48  ;;  %1173 = vperm.xlu0 %1275, %v1168_v46   ;;  %v1814_v50 = vpop.permute.xlu1 %313 }
  0xf7   :  { %vm317_vm13 = vcmp.eq.s32.totalorder %v1814_v50, 1 }
  0xf8   :  { %v589_v51 = vmul.f32 1.442695, %v588_v49 }
  0xfa   :  { %1282 = vpow2.f32 %v589_v51 }
  0xfe   :  { %1182 = vperm.xlu0 %1275, %v1171_v52   ;;  %v1818_v7 = vpop.permute.xlu1 %348 }
  0xff   :  { %vm352_vm7 = vcmp.eq.s32.totalorder %v1818_v7, 1 }
 0x100   :  { %v1808_v61 = vpop.eup %1282 }
 0x101   :  { %2332 = vst [vmem:[#allocation30_spill] sm:$0xff] %v1808_v61  ;;  %v591_v62 = vsel %vm584_vm15, %v1808_v61, 0.0  ;;  %vm878_vm15 = vcmp.eq.s32.totalorder %v1732_v1, 0 }
 0x102   :  { %592 = vadd.xlane.f32.xlu1 %v591_v62  ;;  %v882_v17 = vsel %vm878_vm15, 1, %v2311_v3  ;;  %vm961_vm15 = vcmp.eq.s32.totalorder %v1718_v60, 2 }
 0x103   :  { %v1880_v33 = vsel %vm961_vm15, 1, %v2311_v3 }
 0x106   :  { %v1824_v14 = vpop.permute.xlu1 %383 }
 0x107   :  { %vm387_vm15 = vcmp.eq.s32.totalorder %v1824_v14, 1 }
 0x10e   :  { %v1836_v20 = vpop.permute.xlu1 %418 }
 0x116   :  { %v1889_v41 = vpop.permute.xlu1 %453 }
 0x11b   :  { %783 = vperm.xlu1 %1276, %v781_v11  }
 0x123   :  { %889 = vperm.xlu1 %1276, %v882_v17  }
 0x125   :  { %v221_v31 = vpop.f32.mrf.mxu1 }
 0x126   :  { %v1840_v22 = vadd.f32 %v1833_v19, %v221_v31 }
 0x128   :  { %v248_v25 = vsel %vm2299_vm1, %v1840_v22, -3.4028235e+38  ;;  %v283_v27 = vsel %vm2301_vm5, %v1840_v22, -3.4028235e+38  ;;  %vm456_vm1 = vcmp.eq.s32.totalorder %v1786_v40, 1  ;;  %vm2335_vm5 = vcmp.eq.s32.totalorder %v1773_v34, 1 }
 0x129   :  { %v251_v37 = vsel %vm153_vm4, %v248_v25, -inf  ;;  %v318_v39 = vsel %vm2300_vm11, %v1840_v22, -3.4028235e+38  ;;  %v286_v48 = vsel %vm153_vm4, %v283_v27, -inf  ;;  %v353_v52 = vsel %vm2305_vm12, %v1840_v22, -3.4028235e+38 }
 0x12a   :  { %vm2334_vm11 = vcmp.eq.s32.totalorder %v1816_v5, 1  ;;  %vm457_vm12 = vcmp.eq.s32.totalorder %v1889_v41, 1 }
 0x12b   :  { %895 = vperm.xlu1 %1276, %v884_v21   ;;  %v388_v62 = vsel %vm2334_vm11, %v1840_v22, -3.4028235e+38  ;;  %vm490_vm11 = vcmp.eq.s32.totalorder %v1868_v28, 1 }
 0x12d   :  { %v224_v24 = vpop.f32.mrf.mxu1 }
 0x12e   :  { %v1862_v26 = vadd.f32 %v1833_v19, %v224_v24  ;;  %v321_v24 = vsel %vm153_vm4, %v318_v39, -inf  ;;  %v391_v39 = vsel %vm153_vm4, %v388_v62, -inf }
 0x130   :  { %v249_v35 = vsel %vm2304_vm2, %v1862_v26, -3.4028235e+38  ;;  %v284_v46 = vsel %vm2302_vm9, %v1862_v26, -3.4028235e+38  ;;  %v319_v51 = vsel %vm2303_vm3, %v1862_v26, -3.4028235e+38 }
 0x131   :  { %v252_v44 = vsel %vm153_vm4, %v249_v35, -inf  ;;  %v354_v11 = vsel %vm2335_vm5, %v1862_v26, -3.4028235e+38  ;;  %vm2336_vm9 = vcmp.eq.s32.totalorder %v1822_v12, 1  ;;  %vm2337_vm3 = vcmp.eq.s32.totalorder %v1828_v18, 1 }
 0x132   :  { %v254_v49 = vmax.f32 %v251_v37, %v252_v44  ;;  %v423_v17 = vsel %vm2336_vm9, %v1840_v22, -3.4028235e+38  ;;  %v458_v31 = vsel %vm2337_vm3, %v1840_v22, -3.4028235e+38  ;;  %vm422_vm2 = vcmp.eq.s32.totalorder %v1836_v20, 1 }
 0x133   :  { %930 = vperm.xlu1 %1276, %v923_v30   ;;  %v287_v21 = vsel %vm153_vm4, %v284_v46, -inf  ;;  %v389_v25 = vsel %vm386_vm10, %v1862_v26, -3.4028235e+38  ;;  %v424_v27 = vsel %vm421_vm0, %v1862_v26, -3.4028235e+38  ;;  %v1930_v35 = vsel %vm1000_vm6, 1, %v2311_v3 }
 0x134   :  { %v322_v37 = vsel %vm153_vm4, %v319_v51, -inf  ;;  %v356_v44 = vsel %vm153_vm4, %v353_v52, -inf  ;;  %v357_v6 = vsel %vm153_vm4, %v354_v11, -inf  ;;  %v426_v57 = vsel %vm153_vm4, %v423_v17, -inf  ;;  %v1956_v17 = vpop.permute.xlu2 %488 }
 0x135   :  { %v227_v30 = vpop.f32.mrf.mxu1  ;;  %v461_v55 = vsel %vm153_vm4, %v458_v31, -inf  ;;  %v289_v54 = vmax.f32 %v286_v48, %v287_v21  ;;  %v392_v53 = vsel %vm153_vm4, %v389_v25, -inf  ;;  %v427_v3 = vsel %vm153_vm4, %v424_v27, -inf }
 0x136   :  { %v1936_v46 = vadd.f32 %v1833_v19, %v227_v30  ;;  %v459_v51 = vsel %vm456_vm1, %v1862_v26, -3.4028235e+38  ;;  %v324_v11 = vmax.f32 %v321_v24, %v322_v37  ;;  %vm491_vm3 = vcmp.eq.s32.totalorder %v1792_v43, 1 }
 0x137   :  { %v359_v27 = vmax.f32 %v356_v44, %v357_v6  ;;  %vm492_vm5 = vcmp.eq.s32.totalorder %v1956_v17, 1  ;;  %v394_v9 = vmax.f32 %v391_v39, %v392_v53  ;;  %vm2338_vm9 = vcmp.eq.s32.totalorder %v1756_v23, 1 }
 0x138   :  { %v250_v52 = vsel %vm247_vm14, %v1936_v46, -3.4028235e+38  ;;  %v285_v62 = vsel %vm282_vm8, %v1936_v46, -3.4028235e+38  ;;  %v320_v48 = vsel %vm317_vm13, %v1936_v46, -3.4028235e+38 }
 0x139   :  { %v253_v31 = vsel %vm153_vm4, %v250_v52, -inf  ;;  %v288_v21 = vsel %vm153_vm4, %v285_v62, -inf  ;;  %v323_v25 = vsel %vm153_vm4, %v320_v48, -inf  ;;  %v355_v24 = vsel %vm352_vm7, %v1936_v46, -3.4028235e+38 }
 0x13a   :  { %v255_v30 = vmax.f32 %v254_v49, %v253_v31  ;;  %v290_v19 = vmax.f32 %v289_v54, %v288_v21  ;;  %v325_v61 = vmax.f32 %v324_v11, %v323_v25  ;;  %v390_v37 = vsel %vm387_vm15, %v1936_v46, -3.4028235e+38 }
 0x13b   :  { %968 = vperm.xlu1 %1276, %v963_v32   ;;  %v429_v52 = vmax.f32 %v426_v57, %v427_v3  ;;  %v462_v62 = vsel %vm153_vm4, %v459_v51, -inf  ;;  %v358_v49 = vsel %vm153_vm4, %v355_v24, -inf  ;;  %v393_v53 = vsel %vm153_vm4, %v390_v37, -inf }
 0x13c   :  { %v256_v48 = vrot.slane %v255_v30, 4  ;;  %v291_v6 = vrot.slane %v290_v19, 4  ;;  %v326_v44 = vrot.slane %v325_v61, 4  ;;  %v360_v54 = vmax.f32 %v359_v27, %v358_v49 }
 0x13d   :  { %v425_v32 = vsel %vm422_vm2, %v1936_v46, -3.4028235e+38  ;;  %v460_v39 = vsel %vm457_vm12, %v1936_v46, -3.4028235e+38  ;;  %v395_v51 = vmax.f32 %v394_v9, %v393_v53  ;;  %v464_v27 = vmax.f32 %v461_v55, %v462_v62 }
 0x13e   :  { %v257_v11 = vmax.f32 %v255_v30, %v256_v48  ;;  %v292_v3 = vmax.f32 %v290_v19, %v291_v6  ;;  %v327_v57 = vmax.f32 %v325_v61, %v326_v44  ;;  %v361_v31 = vrot.slane %v360_v54, 4 }
 0x13f   :  { %v428_v21 = vsel %vm153_vm4, %v425_v32, -inf  ;;  %v463_v25 = vsel %vm153_vm4, %v460_v39, -inf  ;;  %v396_v8 = vrot.slane %v395_v51, 4  ;;  %v493_v30 = vsel %vm490_vm11, %v1840_v22, -3.4028235e+38 }
 0x140   :  { %v258_v24 = vrot.slane %v257_v11, 2  ;;  %v293_v37 = vrot.slane %v292_v3, 2  ;;  %v328_v49 = vrot.slane %v327_v57, 2  ;;  %v362_v4 = vmax.f32 %v360_v54, %v361_v31 }
 0x141   :  { %v430_v0 = vmax.f32 %v429_v52, %v428_v21  ;;  %v465_v10 = vmax.f32 %v464_v27, %v463_v25  ;;  %v494_v48 = vsel %vm491_vm3, %v1862_v26, -3.4028235e+38  ;;  %v397_v62 = vmax.f32 %v395_v51, %v396_v8 }
 0x142   :  { %v259_v19 = vmax.f32 %v257_v11, %v258_v24  ;;  %v294_v61 = vmax.f32 %v292_v3, %v293_v37  ;;  %v329_v9 = vmax.f32 %v327_v57, %v328_v49  ;;  %v363_v55 = vrot.slane %v362_v4, 2 }
 0x143   :  { %974 = vperm.xlu1 %1276, %v1880_v33   ;;  %v431_v6 = vrot.slane %v430_v0, 4  ;;  %v495_v52 = vsel %vm492_vm5, %v1936_v46, -3.4028235e+38  ;;  %v466_v32 = vrot.slane %v465_v10, 4  ;;  %v398_v11 = vrot.slane %v397_v62, 2 }
 0x144   :  { %v260_v44 = vrot.slane %v259_v19, 1  ;;  %v295_v54 = vrot.slane %v294_v61, 1  ;;  %v330_v53 = vrot.slane %v329_v9, 1  ;;  %v364_v39 = vmax.f32 %v362_v4, %v363_v55 }
 0x145   :  { %v432_v3 = vmax.f32 %v430_v0, %v431_v6  ;;  %v496_v57 = vsel %vm153_vm4, %v493_v30, -inf  ;;  %v467_v25 = vmax.f32 %v465_v10, %v466_v32  ;;  %v497_v33 = vsel %vm153_vm4, %v494_v48, -inf }
 0x146   :  { %v261_v31 = vmax.f32 %v259_v19, %v260_v44  ;;  %v296_v21 = vmax.f32 %v294_v61, %v295_v54  ;;  %v365_v8 = vrot.slane %v364_v39, 1  ;;  %v399_v51 = vmax.f32 %v397_v62, %v398_v11 }
 0x147   :  { %v433_v27 = vrot.slane %v432_v3, 2  ;;  %v498_v24 = vsel %vm153_vm4, %v495_v52, -inf  ;;  %v331_v49 = vmax.f32 %v329_v9, %v330_v53  ;;  %v468_v13 = vrot.slane %v467_v25, 2 }
 0x148   :  { %v264_v37 = vsel %vm247_vm14, %v261_v31, -3.4028235e+38  ;;  %v263_v0 = vsel %vm2338_vm9, %v261_v31, -3.4028235e+38  ;;  %v366_v30 = vmax.f32 %v364_v39, %v365_v8  ;;  %v400_v10 = vrot.slane %v399_v51, 1 }
 0x149   :  { %v299_v4 = vsel %vm282_vm8, %v296_v21, %v264_v37  ;;  %v499_v19 = vmax.f32 %v496_v57, %v497_v33  ;;  %v434_v48 = vmax.f32 %v432_v3, %v433_v27  ;;  %v469_v55 = vmax.f32 %v467_v25, %v468_v13  ;;  %v2051_v27 = vpop.permute.xlu2 %677 }
 0x14a   :  { %v334_v61 = vsel %vm317_vm13, %v331_v49, %v299_v4  ;;  %v401_v9 = vmax.f32 %v399_v51, %v400_v10  ;;  %vm1003_vm14 = vcmp.eq.s32.totalorder %v1710_v58, 3  ;;  %vm2339_vm8 = vcmp.eq.s32.totalorder %v1799_v47, 1  ;;  %v2353_v4 = vld [vmem:[#allocation20_spill] sm:$0xff]  ;;  %v2354_v10 = vld [vmem:[#allocation21_spill] sm:$0xff] }
 0x14b   :  { %1009 = vperm.xlu1 %1276, %v1930_v35   ;;  %v369_v45 = vsel %vm352_vm7, %v366_v30, %v334_v61  ;;  %v500_v62 = vmax.f32 %v499_v19, %v498_v24  ;;  %v435_v23 = vrot.slane %v434_v48, 1  ;;  %v470_v59 = vrot.slane %v469_v55, 1  ;;  %v149_v24 = vld [vmem:[#allocation7] sm:$0xff]  ;;  %v2355_v19 = vld [vmem:[#allocation22_spill] sm:$0xff]  ;;  %v2066_v61 = vpop.permute.xlu0 %768 }
 0x14c   :  { %v404_v6 = vsel %vm387_vm15, %v401_v9, %v369_v45  ;;  %v298_v50 = vsel %vm2339_vm8, %v296_v21, %v263_v0  ;;  %vm2340_vm13 = vcmp.eq.s32.totalorder %v1748_v15, 1  ;;  %vm2341_vm6 = vcmp.eq.s32.totalorder %v1766_v29, 1 }
 0x14d   :  { %v501_v52 = vrot.slane %v500_v62, 4  ;;  %v262_v13 = vsel %vm2340_vm13, %v261_v31, -3.4028235e+38  ;;  %v436_v35 = vmax.f32 %v434_v48, %v435_v23  ;;  %v333_v7 = vsel %vm2341_vm6, %v331_v49, %v298_v50 }
 0x14e   :  { %vm2342_vm7 = vcmp.eq.s32.totalorder %v1790_v42, 1  ;;  %v471_v54 = vmax.f32 %v469_v55, %v470_v59  ;;  %vm2343_vm9 = vcmp.eq.s32.totalorder %v1773_v34, 1  ;;  %vm2344_vm15 = vcmp.eq.s32.totalorder %v1804_v56, 1 }
 0x14f   :  { %v297_v44 = vsel %vm2342_vm7, %v296_v21, %v262_v13  ;;  %v502_v53 = vmax.f32 %v500_v62, %v501_v52  ;;  %v368_v14 = vsel %vm2343_vm9, %v366_v30, %v333_v7  ;;  %v2345_v47 = vmov 0   ;;  %v2087_v13 = vld [vmem:[%s2291_s7 + $0x8] sm:$0xff] }
 0x150   :  { %v332_v32 = vsel %vm2344_vm15, %v331_v49, %v297_v44  ;;  %v1007_v39 = vsel %vm1003_vm14, 1, %v2345_v47  ;;  %v439_v15 = vsel %vm422_vm2, %v436_v35, %v404_v6  ;;  %v403_v29 = vsel %vm386_vm10, %v401_v9, %v368_v14  ;;  %v2351_v49 = vld [vmem:[#allocation23_spill] sm:$0xff]  ;;  %v2097_v14 = vld [vmem:[%s2291_s7 + $0x10] sm:$0xff] }
 0x151   :  { %vm2346_vm8 = vcmp.eq.s32.totalorder %v1812_v2, 1  ;;  %v474_v11 = vsel %vm457_vm12, %v471_v54, %v439_v15  ;;  %v503_v3 = vrot.slane %v502_v53, 2  ;;  %v438_v34 = vsel %vm421_vm0, %v436_v35, %v403_v29  ;;  %v2103_v15 = vld [vmem:[%s2291_s7 + $0x18] sm:$0x7f] }
 0x152   :  { %v367_v42 = vsel %vm2346_vm8, %v366_v30, %v332_v32  ;;  %v473_v56 = vsel %vm456_vm1, %v471_v54, %v438_v34  ;;  %vm2347_vm14 = vcmp.eq.s32.totalorder %v1816_v5, 1  ;;  %vm2348_vm2 = vcmp.eq.s32.totalorder %v1822_v12, 1 }
 0x153   :  { %v402_v20 = vsel %vm2347_vm14, %v401_v9, %v367_v42  ;;  %1018 = vperm.xlu1 %1276, %v1007_v39   ;;  %v504_v57 = vmax.f32 %v502_v53, %v503_v3  ;;  %vm2349_vm10 = vcmp.eq.s32.totalorder %v1828_v18, 1  ;;  %vm1043_vm12 = vcmp.eq.s32.totalorder %v1718_v60, 4  ;;  %v887_v55 = vpop.permute.xlu0 %886 }
 0x154   :  { %v437_v36 = vsel %vm2348_vm2, %v436_v35, %v402_v20  ;;  %v1047_v38 = vsel %vm1043_vm12, 1, %v2345_v47  ;;  %vm1083_vm0 = vcmp.eq.s32.totalorder %v1732_v1, 5  ;;  %vm1123_vm1 = vcmp.eq.s32.totalorder %v1727_v63, 6  ;;  %v2060_v63 = vpop.permute.xlu2 %693 }
 0x155   :  { %v472_v2 = vsel %vm2349_vm10, %v471_v54, %v437_v36  ;;  %v505_v41 = vrot.slane %v504_v57, 1  ;;  %v1087_v43 = vsel %vm1083_vm0, 1, %v2345_v47  ;;  %v1127_v37 = vsel %vm1123_vm1, 1, %v2345_v47 }
 0x156   :  { %vm897_vm13 = vcmp.eq.s32.totalorder %v887_v55, 1  ;;  %vm681_vm15 = vcmask 260096   ;;  %vm1205_vm12 = vcmask 1040384   ;;  %vm601_vm0 = vcmask 64512  }
 0x157   :  { %v506_v31 = vmax.f32 %v504_v57, %v505_v41  ;;  %vm679_vm1 = vcmp.eq.s32.totalorder %v2051_v27, 1 }
 0x159   :  { %v509_v40 = vsel %vm492_vm5, %v506_v31, %v474_v11  ;;  %v508_v5 = vsel %vm491_vm3, %v506_v31, %v473_v56  ;;  %v507_v21 = vsel %vm490_vm11, %v506_v31, %v472_v2  ;;  %vm519_vm11 = vcmask 195584  }
 0x15a   :  { %v512_v12 = vsub.f32 %v1936_v46, %v509_v40  ;;  %v511_v18 = vsub.f32 %v1862_v26, %v508_v5  ;;  %v510_v25 = vsub.f32 %v1840_v22, %v507_v21  ;;  %v2350_v46 = vld [vmem:[#allocation24_spill] sm:$0xff]  ;;  %vm1126_vm3 = vcmp.eq.s32.totalorder %v1710_v58, 6 }
 0x15b   :  { %1056 = vperm.xlu1 %1276, %v1047_v38   ;;  %v1130_v30 = vsel %vm1126_vm3, 1, %v2345_v47  ;;  %vm1166_vm5 = vcmp.eq.s32.totalorder %v1718_v60, 7  ;;  %v893_v62 = vpop.permute.xlu0 %892  ;;  %v2081_v60 = vld [vmem:[%s2291_s7] sm:$0xff]  ;;  %s1475_s7 = smov 32  }
 0x15c   :  { %v517_v33 = vmul.f32 1.442695, %v512_v12  ;;  %v515_v8 = vmul.f32 1.442695, %v511_v18  ;;  %v513_v51 = vmul.f32 1.442695, %v510_v25  ;;  %v2070_v58 = vpop.permute.xlu2 %708 }
 0x15d   :  { %v1170_v48 = vsel %vm1166_vm5, 1, %v2345_v47  ;;  %v901_v52 = vsel %vm897_vm13, %v2081_v60, 0.0  ;;  %vm899_vm7 = vcmp.eq.s32.totalorder %v893_v62, 1  ;;  %vm710_vm3 = vcmp.eq.s32.totalorder %v2070_v58, 1 }
 0x15e   :  { %1284 = vpow2.f32 %v517_v33  ;;  %v905_v44 = vsel %vm153_vm4, %v901_v52, -inf  ;;  %v903_v32 = vsel %vm899_vm7, %v2097_v14, 0.0  ;;  %v2357_v52 = vld [vmem:[#allocation25_spill] sm:$0xff]  ;;  %vm770_vm7 = vcmp.eq.s32.totalorder %v2066_v61, 1 }
 0x15f   :  { %1286 = vpow2.f32 %v515_v8  ;;  %v907_v42 = vsel %vm153_vm4, %v903_v32, -inf }
 0x160   :  { %1288 = vpow2.f32 %v513_v51 }
 0x163   :  { %1094 = vperm.xlu1 %1276, %v1087_v43   ;;  %v928_v6 = vpop.permute.xlu0 %927 }
 0x164   :  { %v1285_v28 = vpop.eup %1284  ;;  %v2072_v45 = vpop.permute.xlu2 %723  ;;  %vm938_vm2 = vcmp.eq.s32.totalorder %v928_v6, 1 }
 0x165   :  { %v1287_v17 = vpop.eup %1286  ;;  %536 = vmatpush.msra.mxu2 %v1285_v28  ;;  %v545_v26 = vmul.f32 %v1285_v28, %v1634_v16  ;;  %v2352_v16 = vld [vmem:[#allocation19_spill] sm:$0xff]  ;;  %v942_v36 = vsel %vm938_vm2, %v2081_v60, 0.0  ;;  %vm725_vm5 = vcmp.eq.s32.totalorder %v2072_v45, 1 }
 0x166   :  { %v1289_v22 = vpop.eup %1288  ;;  %v544_v1 = vmul.f32 %v1287_v17, %v2350_v46  ;;  %v946_v21 = vsel %vm153_vm4, %v942_v36, -inf }
 0x167   :  { %537 = vmatpush.msra.mxu2 %v1287_v17  ;;  %559 = vmatpush.msra.mxu3 %v545_v26  ;;  %v543_v0 = vmul.f32 %v1289_v22, %v2351_v49 }
 0x169   :  { %538 = vmatpush.msra.mxu2 %v1289_v22  ;;  %560 = vmatpush.msra.mxu3 %v544_v1 }
 0x16a   :  { %1252 = vmatmul.msk.f32.vlgmr.msra.gmra.mxu2 %vm519_vm11, %v149_v24 }
 0x16b   :  { %561 = vmatpush.msra.mxu3 %v543_v0  ;;  %1132 = vperm.xlu1 %1276, %v1127_v37   ;;  %v934_v47 = vpop.permute.xlu0 %933 }
 0x16c   :  { %1253 = vmatmul.msk.f32.vlgmr.msra.gmra.mxu3 %vm519_vm11, %v149_v24  ;;  %v2074_v23 = vpop.permute.xlu2 %738  ;;  %vm940_vm8 = vcmp.eq.s32.totalorder %v934_v47, 1  ;;  %vm695_vm11 = vcmp.eq.s32.totalorder %v2060_v63, 1 }
 0x16d   :  { %642 = vmatpush.msrb.mxu3 %v2352_v16  ;;  %v944_v56 = vsel %vm940_vm8, %v2097_v14, 0.0  ;;  %vm740_vm13 = vcmp.eq.s32.totalorder %v2074_v23, 1  ;;  %vm798_vm8 = vcmask 56320  }
 0x16e   :  { %v948_v31 = vsel %vm153_vm4, %v944_v56, -inf }
 0x16f   :  { %643 = vmatpush.msrb.mxu3 %v2353_v4  ;;  %v2356_v4 = vld [vmem:[#allocation30_spill] sm:$0xff] }
 0x171   :  { %644 = vmatpush.msrb.mxu3 %v2354_v10 }
 0x173   :  { %1141 = vperm.xlu1 %1276, %v1130_v30   ;;  %645 = vmatpush.msrb.mxu3 %v2355_v19 }
 0x174   :  { %v2089_v35 = vpop.permute.xlu2 %753 }
 0x175   :  { %v593_v9 = vpop.xlane.xlu1 %592 }
 0x176   :  { %1290 = vrcp.f32 %v593_v9  ;;  %v2359_v9 = vld [vmem:[#allocation27_spill] sm:$0xff] }
 0x17b   :  { %1179 = vperm.xlu1 %1276, %v1170_v48   ;;  %v596_v48 = vld [vmem:[#allocation9] sm:$0x7f] }
 0x17c   :  { %v937_v3 = vpop.permute.xlu2 %936  ;;  %v1291_v49 = vpop.eup %1290 }
 0x17d   :  { %vm941_vm14 = vcmp.eq.s32.totalorder %v937_v3, 1  ;;  %v595_v30 = vmul.f32 %v1291_v49, %v2356_v4 }
 0x17e   :  { %v945_v57 = vsel %vm941_vm14, %v2103_v15, 0.0  ;;  %vm802_vm14 = vcmask 1046528  }
 0x17f   :  { %v949_v5 = vsel %vm681_vm15, %v945_v57, -inf  ;;  %v598_v10 = vperm.slane %v595_v30, 0 }
 0x180   :  { %v951_v18 = vmax.f32 %v948_v31, %v949_v5 }
 0x181   :  { %v600_v6 = vmul.f32 %v598_v10, %v596_v48 }
 0x18d   :  { %v2076_v59 = vpop.permute.xlu1 %783 }
 0x195   :  { %v890_v50 = vpop.permute.xlu1 %889 }
 0x196   :  { %vm898_vm6 = vcmp.eq.s32.totalorder %v890_v50, 1  ;;  %v2358_v50 = vld [vmem:[#allocation26_spill] sm:$0xff] }
 0x197   :  { %v902_v7 = vsel %vm898_vm6, %v2087_v13, 0.0  ;;  %vm755_vm6 = vcmp.eq.s32.totalorder %v2089_v35, 1 }
 0x198   :  { %v906_v54 = vsel %vm153_vm4, %v902_v7, -inf  ;;  %v2360_v7 = vld [vmem:[#allocation28_spill] sm:$0xff] }
 0x199   :  { %v909_v53 = vmax.f32 %v905_v44, %v906_v54 }
 0x19d   :  { %v896_v39 = vpop.permute.xlu1 %895 }
 0x19e   :  { %vm900_vm9 = vcmp.eq.s32.totalorder %v896_v39, 1 }
 0x19f   :  { %v904_v29 = vsel %vm900_vm9, %v2103_v15, 0.0  ;;  %vm785_vm9 = vcmp.eq.s32.totalorder %v2076_v59, 1  ;;  %v972_v59 = vpop.permute.xlu0 %971 }
 0x1a0   :  { %v908_v11 = vsel %vm681_vm15, %v904_v29, -inf  ;;  %v2362_v29 = vld [vmem:[#allocation31_spill] sm:$0xff] }
 0x1a1   :  { %v910_v34 = vmax.f32 %v907_v42, %v908_v11 }
 0x1a3   :  { %v911_v20 = vmax.f32 %v909_v53, %v910_v34  ;;  %v2361_v53 = vld [vmem:[#allocation29_spill] sm:$0xff] }
 0x1a5   :  { %v912_v2 = vrot.slane %v911_v20, 4  ;;  %v931_v41 = vpop.permute.xlu1 %930 }
 0x1a6   :  { %vm939_vm10 = vcmp.eq.s32.totalorder %v931_v41, 1 }
 0x1a7   :  { %v913_v38 = vmax.f32 %v911_v20, %v912_v2  ;;  %v943_v40 = vsel %vm939_vm10, %v2087_v13, 0.0 }
 0x1a8   :  { %v947_v12 = vsel %vm153_vm4, %v943_v40, -inf }
 0x1a9   :  { %v950_v25 = vmax.f32 %v946_v21, %v947_v12  ;;  %v914_v33 = vrot.slane %v913_v38, 2 }
 0x1ab   :  { %v952_v8 = vmax.f32 %v950_v25, %v951_v18  ;;  %v915_v43 = vmax.f32 %v913_v38, %v914_v33 }
 0x1ad   :  { %v953_v51 = vrot.slane %v952_v8, 4  ;;  %v916_v26 = vrot.slane %v915_v43, 1  ;;  %v2192_v61 = vpop.permute.xlu1 %968 }
 0x1af   :  { %v954_v28 = vmax.f32 %v952_v8, %v953_v51  ;;  %v917_v1 = vmax.f32 %v915_v43, %v916_v26 }
 0x1b1   :  { %v955_v17 = vrot.slane %v954_v28, 2 }
 0x1b3   :  { %v956_v22 = vmax.f32 %v954_v28, %v955_v17 }
 0x1b5   :  { %v957_v46 = vrot.slane %v956_v22, 1 }
 0x1b7   :  { %v958_v24 = vmax.f32 %v956_v22, %v957_v46 }
 0x1b9   :  { %v2116_v37 = vsel %vm1205_vm12, %v917_v1, %v958_v24 }
 0x1ed   :  { %v540_v0 = vpop.f32.mrf.mxu2 }
 0x1ee   :  { %v566_v16 = vmax.f32 %v540_v0, 1.0 }
 0x1ef   :  { %v563_v19 = vpop.f32.mrf.mxu3 }
 0x1f0   :  { %1292 = vrcp.f32 %v566_v16 }
 0x1f6   :  { %v1293_v55 = vpop.eup %1292 }
 0x1f7   :  { %v568_v62 = vmul.f32 %v1293_v55, %v563_v19 }
 0x1f9   :  { %620 = vmatpush.msrb.mxu2 %v568_v62 }
 0x1fa   :  { %1257 = vmatmul.msk.f32.vlgmr.msrb.gmra.mxu2 %vm601_vm0, %v600_v6 }
 0x1fb   :  { %666 = vmatpush.msra.mxu2 %v2357_v52 }
 0x1fd   :  { %667 = vmatpush.msra.mxu2 %v2358_v50 }
 0x1ff   :  { %668 = vmatpush.msra.mxu2 %v2359_v9 }
 0x201   :  { %669 = vmatpush.msra.mxu2 %v2360_v7 }
 0x27d   :  { %v2123_v44 = vpop.f32.mrf.mxu2 }
 0x27e   :  { %1258 = vmatmul.msk.f32.vlgmr.msrb.gmra.mxu3 %vm153_vm4, %v2123_v44 }
 0x301   :  { %v647_v54 = vpop.f32.mrf.mxu3 }
 0x302   :  { %v648_v32 = vadd.f32 %v2361_v53, %v647_v54 }
 0x304   :  { %v650_v47 = vmax.f32 %v648_v32, 0.0 }
 0x306   :  { %1259 = vmatmul.msk.f32.vlgmr.msra.gmra.mxu2 %vm153_vm4, %v650_v47 }
 0x389   :  { %v671_v39 = vpop.f32.mrf.mxu2 }
 0x38a   :  { %v2133_v42 = vadd.f32 %v2362_v29, %v671_v39 }
 0x38c   :  { %v680_v11 = vsel %vm679_vm1, %v2133_v42, -3.4028235e+38  ;;  %v696_v3 = vsel %vm695_vm11, %v2133_v42, -3.4028235e+38  ;;  %v711_v34 = vsel %vm710_vm3, %v2133_v42, -3.4028235e+38 }
 0x38d   :  { %v682_v56 = vsel %vm681_vm15, %v680_v11, -inf  ;;  %v697_v20 = vsel %vm681_vm15, %v696_v3, -inf  ;;  %v712_v57 = vsel %vm681_vm15, %v711_v34, -inf  ;;  %v726_v36 = vsel %vm725_vm5, %v2133_v42, -3.4028235e+38 }
 0x38e   :  { %v683_v2 = vrot.slane %v682_v56, 4  ;;  %v698_v41 = vrot.slane %v697_v20, 4  ;;  %v713_v31 = vrot.slane %v712_v57, 4  ;;  %v727_v38 = vsel %vm681_vm15, %v726_v36, -inf }
 0x38f   :  { %v728_v40 = vrot.slane %v727_v38, 4  ;;  %v741_v5 = vsel %vm740_vm13, %v2133_v42, -3.4028235e+38  ;;  %v756_v21 = vsel %vm755_vm6, %v2133_v42, -3.4028235e+38 }
 0x390   :  { %v684_v12 = vmax.f32 %v682_v56, %v683_v2  ;;  %v699_v18 = vmax.f32 %v697_v20, %v698_v41  ;;  %v714_v25 = vmax.f32 %v712_v57, %v713_v31  ;;  %v742_v33 = vsel %vm681_vm15, %v741_v5, -inf }
 0x391   :  { %v729_v8 = vmax.f32 %v727_v38, %v728_v40  ;;  %v743_v51 = vrot.slane %v742_v33, 4  ;;  %v757_v43 = vsel %vm681_vm15, %v756_v21, -inf  ;;  %v771_v28 = vsel %vm770_vm7, %v2133_v42, -3.4028235e+38 }
 0x392   :  { %v685_v17 = vrot.slane %v684_v12, 2  ;;  %v700_v26 = vrot.slane %v699_v18, 2  ;;  %v715_v22 = vrot.slane %v714_v25, 2  ;;  %v758_v46 = vrot.slane %v757_v43, 4 }
 0x393   :  { %v730_v1 = vrot.slane %v729_v8, 2  ;;  %v744_v24 = vmax.f32 %v742_v33, %v743_v51  ;;  %v772_v49 = vsel %vm681_vm15, %v771_v28, -inf  ;;  %v786_v0 = vsel %vm785_vm9, %v2133_v42, -3.4028235e+38  ;;  %v626_v28 = vld [vmem:[#allocation10] sm:$0xff] }
 0x394   :  { %v686_v16 = vmax.f32 %v684_v12, %v685_v17  ;;  %v701_v4 = vmax.f32 %v699_v18, %v700_v26  ;;  %v716_v30 = vmax.f32 %v714_v25, %v715_v22  ;;  %v759_v10 = vmax.f32 %v757_v43, %v758_v46  ;;  %v975_v17 = vpop.permute.xlu1 %974  ;;  %v978_v26 = vpop.permute.xlu0 %977 }
 0x395   :  { %v731_v19 = vmax.f32 %v729_v8, %v730_v1  ;;  %v745_v48 = vrot.slane %v744_v24, 2  ;;  %v773_v55 = vrot.slane %v772_v49, 4  ;;  %v787_v62 = vsel %vm681_vm15, %v786_v0, -inf  ;;  %v1016_v22 = vpop.permute.xlu2 %1015 }
 0x396   :  { %v687_v6 = vrot.slane %v686_v16, 1  ;;  %v702_v52 = vrot.slane %v701_v4, 1  ;;  %v717_v50 = vrot.slane %v716_v30, 1  ;;  %v760_v9 = vrot.slane %v759_v10, 2 }
 0x397   :  { %v732_v7 = vrot.slane %v731_v19, 1  ;;  %v746_v54 = vmax.f32 %v744_v24, %v745_v48  ;;  %v774_v53 = vmax.f32 %v772_v49, %v773_v55  ;;  %v788_v32 = vrot.slane %v787_v62, 4 }
 0x398   :  { %v688_v47 = vmax.f32 %v686_v16, %v687_v6  ;;  %v703_v39 = vmax.f32 %v701_v4, %v702_v52  ;;  %v761_v29 = vmax.f32 %v759_v10, %v760_v9  ;;  %v718_v20 = vmax.f32 %v716_v30, %v717_v50 }
 0x399   :  { %v747_v11 = vrot.slane %v746_v54, 1  ;;  %v775_v3 = vrot.slane %v774_v53, 2  ;;  %v789_v34 = vmax.f32 %v787_v62, %v788_v32  ;;  %v733_v2 = vmax.f32 %v731_v19, %v732_v7 }
 0x39a   :  { %v689_v56 = vsel %vm679_vm1, %v688_v47, -3.4028235e+38  ;;  %v762_v57 = vrot.slane %v761_v29, 1  ;;  %vm1022_vm2 = vcmp.eq.s32.totalorder %v1016_v22, 1 }
 0x39b   :  { %v704_v36 = vsel %vm695_vm11, %v703_v39, %v689_v56  ;;  %v776_v41 = vmax.f32 %v774_v53, %v775_v3  ;;  %v790_v31 = vrot.slane %v789_v34, 2  ;;  %v748_v40 = vmax.f32 %v746_v54, %v747_v11 }
 0x39c   :  { %v719_v38 = vsel %vm710_vm3, %v718_v20, %v704_v36  ;;  %v763_v21 = vmax.f32 %v761_v29, %v762_v57  ;;  %v1013_v46 = vpop.permute.xlu0 %1012  ;;  %v1026_v50 = vsel %vm1022_vm2, %v2097_v14, 0.0  ;;  %vm980_vm3 = vcmp.eq.s32.totalorder %v972_v59, 1 }
 0x39d   :  { %v734_v5 = vsel %vm725_vm5, %v733_v2, %v719_v38  ;;  %v777_v12 = vrot.slane %v776_v41, 1  ;;  %v791_v18 = vmax.f32 %v789_v34, %v790_v31  ;;  %v1054_v24 = vpop.permute.xlu2 %1053  ;;  %vm982_vm5 = vcmp.eq.s32.totalorder %v978_v26, 1 }
 0x39e   :  { %v749_v27 = vsel %vm740_vm13, %v748_v40, %v734_v5  ;;  %vm1062_vm10 = vcmp.eq.s32.totalorder %v1054_v24, 1  ;;  %vm1021_vm13 = vcmp.eq.s32.totalorder %v1013_v46, 1  ;;  %v2207_v47 = vsel %vm153_vm4, %v1026_v50, -inf }
 0x39f   :  { %v764_v63 = vsel %vm755_vm6, %v763_v21, %v749_v27  ;;  %v778_v25 = vmax.f32 %v776_v41, %v777_v12  ;;  %v792_v33 = vrot.slane %v791_v18, 1  ;;  %v1066_v9 = vsel %vm1062_vm10, %v2087_v13, 0.0 }
 0x3a0   :  { %v2210_v39 = vsel %vm153_vm4, %v1066_v9, -inf  ;;  %v984_v29 = vsel %vm980_vm3, %v2087_v13, 0.0  ;;  %v986_v34 = vsel %vm982_vm5, %v2103_v15, 0.0  ;;  %v1025_v56 = vsel %vm1021_vm13, %v2087_v13, 0.0 }
 0x3a1   :  { %v779_v8 = vsel %vm770_vm7, %v778_v25, %v764_v63  ;;  %v793_v58 = vmax.f32 %v791_v18, %v792_v33  ;;  %v988_v2 = vsel %vm153_vm4, %v984_v29, -inf  ;;  %v990_v31 = vsel %vm681_vm15, %v986_v34, -inf }
 0x3a2   :  { %v1029_v38 = vsel %vm153_vm4, %v1025_v56, -inf  ;;  %vm979_vm10 = vcmp.eq.s32.totalorder %v2192_v61, 1 }
 0x3a3   :  { %v794_v51 = vsel %vm785_vm9, %v793_v58, %v779_v8  ;;  %vm981_vm9 = vcmp.eq.s32.totalorder %v975_v17, 1  ;;  %v983_v25 = vsel %vm979_vm10, %v2081_v60, 0.0  ;;  %vm1215_vm10 = vcmask 1045504  }
 0x3a4   :  { %v795_v45 = vsub.f32 %v2133_v42, %v794_v51  ;;  %v2194_v42 = vpop.permute.xlu1 %1009  ;;  %v1051_v49 = vpop.permute.xlu0 %1050  ;;  %v985_v21 = vsel %vm981_vm9, %v2097_v14, 0.0  ;;  %vm1209_vm9 = vcmask 1042432  }
 0x3a5   :  { %v1092_v16 = vpop.permute.xlu2 %1091  ;;  %vm1061_vm11 = vcmp.eq.s32.totalorder %v1051_v49, 1  ;;  %v989_v8 = vsel %vm153_vm4, %v985_v21, -inf }
 0x3a6   :  { %v796_v43 = vmul.f32 1.442695, %v795_v45  ;;  %vm1102_vm12 = vcmp.eq.s32.totalorder %v1092_v16, 1  ;;  %v1065_v32 = vsel %vm1061_vm11, %v2081_v60, 0.0  ;;  %v992_v59 = vmax.f32 %v989_v8, %v990_v31 }
 0x3a7   :  { %v1106_v7 = vsel %vm1102_vm12, %v2081_v60, 0.0  ;;  %v2226_v36 = vsel %vm153_vm4, %v1065_v32, -inf }
 0x3a8   :  { %1294 = vpow2.f32 %v796_v43  ;;  %v2214_v11 = vsel %vm153_vm4, %v1106_v7, -inf  ;;  %v1073_v5 = vmax.f32 %v2226_v36, %v2210_v39 }
 0x3ac   :  { %v1019_v1 = vpop.permute.xlu1 %1018  ;;  %v1060_v4 = vpop.permute.xlu0 %1059 }
 0x3ad   :  { %v1101_v30 = vpop.permute.xlu2 %1100  ;;  %vm1064_vm7 = vcmp.eq.s32.totalorder %v1060_v4, 1  ;;  %vm1023_vm2 = vcmp.eq.s32.totalorder %v1019_v1, 1 }
 0x3ae   :  { %v1295_v23 = vpop.eup %1294  ;;  %vm1105_vm0 = vcmp.eq.s32.totalorder %v1101_v30, 1  ;;  %v1068_v41 = vsel %vm1064_vm7, %v2103_v15, 0.0  ;;  %v1027_v63 = vsel %vm1023_vm2, %v2103_v15, 0.0  ;;  %vm1213_vm2 = vcmask 1044480  }
 0x3af   :  { %1260 = vmatpush.msk.msra.mxu3 %vm802_vm14, %v1295_v23  ;;  %v826_v35 = vmul.f32 %v1295_v23, %v2123_v44  ;;  %v1109_v54 = vsel %vm1105_vm0, %v2103_v15, 0.0  ;;  %vm1020_vm0 = vcmp.eq.s32.totalorder %v2194_v42, 1  ;;  %v1072_v12 = vsel %vm681_vm15, %v1068_v41, -inf }
 0x3b0   :  { %1261 = vmatmul.msk.f32.vlgmr.msra.gmra.mxu3 %vm798_vm8, %v626_v28  ;;  %v2217_v3 = vsel %vm681_vm15, %v1109_v54, -inf  ;;  %v1024_v58 = vsel %vm1020_vm0, %v2081_v60, 0.0  ;;  %v1031_v45 = vsel %vm681_vm15, %v1027_v63, -inf  ;;  %v987_v23 = vsel %vm153_vm4, %v983_v25, -inf }
 0x3b1   :  { %1262 = vmatpush.msk.msrb.mxu2 %vm802_vm14, %v826_v35  ;;  %v1028_v17 = vsel %vm153_vm4, %v1024_v58, -inf  ;;  %v1033_v1 = vmax.f32 %v2207_v47, %v1031_v45 }
 0x3b2   :  { %1263 = vmatmul.msk.f32.vlgmr.msrb.gmra.mxu2 %vm798_vm8, %v626_v28 }
 0x3b4   :  { %v1057_v0 = vpop.permute.xlu1 %1056  ;;  %v1098_v10 = vpop.permute.xlu0 %1097 }
 0x3b5   :  { %v1139_v48 = vpop.permute.xlu2 %1138  ;;  %vm1104_vm8 = vcmp.eq.s32.totalorder %v1098_v10, 1  ;;  %vm1063_vm12 = vcmp.eq.s32.totalorder %v1057_v0, 1 }
 0x3b6   :  { %vm1145_vm1 = vcmp.eq.s32.totalorder %v1139_v48, 1  ;;  %v1108_v18 = vsel %vm1104_vm8, %v2097_v14, 0.0  ;;  %v1067_v33 = vsel %vm1063_vm12, %v2097_v14, 0.0  ;;  %vm1211_vm8 = vcmask 1043456  }
 0x3b7   :  { %v1149_v53 = vsel %vm1145_vm1, %v2097_v14, 0.0  ;;  %v1071_v35 = vsel %vm153_vm4, %v1067_v33, -inf  ;;  %v1112_v22 = vsel %vm153_vm4, %v1108_v18, -inf }
 0x3b8   :  { %v2222_v20 = vsel %vm153_vm4, %v1149_v53, -inf  ;;  %v1074_v0 = vmax.f32 %v1071_v35, %v1072_v12 }
 0x3ba   :  { %v1075_v9 = vmax.f32 %v1073_v5, %v1074_v0 }
 0x3bc   :  { %v1095_v44 = vpop.permute.xlu1 %1094  ;;  %v2198_v55 = vpop.permute.xlu0 %1135 }
 0x3bd   :  { %v1177_v6 = vpop.permute.xlu2 %1176  ;;  %vm1103_vm1 = vcmp.eq.s32.totalorder %v1095_v44, 1  ;;  %v1032_v44 = vmax.f32 %v1028_v17, %v1029_v38 }
 0x3be   :  { %vm1185_vm6 = vcmp.eq.s32.totalorder %v1177_v6, 1  ;;  %v1107_v51 = vsel %vm1103_vm1, %v2087_v13, 0.0 }
 0x3bf   :  { %v1189_v57 = vsel %vm1185_vm6, %v2087_v13, 0.0  ;;  %vm1144_vm6 = vcmp.eq.s32.totalorder %v2198_v55, 1  ;;  %v1111_v26 = vsel %vm153_vm4, %v1107_v51, -inf  ;;  %v1034_v6 = vmax.f32 %v1032_v44, %v1033_v1 }
 0x3c0   :  { %v1148_v49 = vsel %vm1144_vm6, %v2087_v13, 0.0  ;;  %v1115_v13 = vmax.f32 %v1112_v22, %v2217_v3  ;;  %v1193_v50 = vsel %vm153_vm4, %v1189_v57, -inf }
 0x3c1   :  { %v1152_v55 = vsel %vm153_vm4, %v1148_v49, -inf  ;;  %v1035_v39 = vrot.slane %v1034_v6, 4 }
 0x3c4   :  { %v2196_v19 = vpop.permute.xlu1 %1132  ;;  %v1174_v52 = vpop.permute.xlu0 %1173 }
 0x3c5   :  { %vm1184_vm3 = vcmp.eq.s32.totalorder %v1174_v52, 1  ;;  %vm1143_vm13 = vcmp.eq.s32.totalorder %v2196_v19, 1 }
 0x3c6   :  { %v1188_v28 = vsel %vm1184_vm3, %v2081_v60, 0.0  ;;  %v1147_v42 = vsel %vm1143_vm13, %v2081_v60, 0.0  ;;  %v1114_v60 = vmax.f32 %v2214_v11, %v1111_v26  ;;  %v1076_v11 = vrot.slane %v1075_v9, 4 }
 0x3c7   :  { %v1192_v4 = vsel %vm153_vm4, %v1188_v28, -inf  ;;  %v1151_v30 = vsel %vm153_vm4, %v1147_v42, -inf }
 0x3c8   :  { %v1155_v7 = vmax.f32 %v1151_v30, %v1152_v55  ;;  %v1196_v54 = vmax.f32 %v1192_v4, %v1193_v50  ;;  %v1116_v53 = vmax.f32 %v1114_v60, %v1115_v13  ;;  %v1077_v57 = vmax.f32 %v1075_v9, %v1076_v11 }
 0x3ca   :  { %v1117_v56 = vrot.slane %v1116_v53, 4  ;;  %v1078_v63 = vrot.slane %v1077_v57, 2 }
 0x3cc   :  { %v1142_v62 = vpop.permute.xlu1 %1141  ;;  %v1183_v27 = vpop.permute.xlu0 %1182  ;;  %v1118_v38 = vmax.f32 %v1116_v53, %v1117_v56  ;;  %v1079_v45 = vmax.f32 %v1077_v57, %v1078_v63 }
 0x3cd   :  { %vm1146_vm11 = vcmp.eq.s32.totalorder %v1142_v62, 1  ;;  %vm1187_vm7 = vcmp.eq.s32.totalorder %v1183_v27, 1 }
 0x3ce   :  { %v1150_v43 = vsel %vm1146_vm11, %v2103_v15, 0.0  ;;  %v1191_v46 = vsel %vm1187_vm7, %v2103_v15, 0.0  ;;  %v1119_v25 = vrot.slane %v1118_v38, 2 }
 0x3cf   :  { %v1154_v24 = vsel %vm681_vm15, %v1150_v43, -inf  ;;  %v1195_v10 = vsel %vm681_vm15, %v1191_v46, -inf  ;;  %vm1207_vm15 = vcmask 1041408  }
 0x3d0   :  { %v1156_v48 = vmax.f32 %v2222_v20, %v1154_v24  ;;  %v1120_v43 = vmax.f32 %v1118_v38, %v1119_v25 }
 0x3d2   :  { %v1157_v47 = vmax.f32 %v1155_v7, %v1156_v48  ;;  %v1121_v17 = vrot.slane %v1120_v43, 1 }
 0x3d4   :  { %v1180_v40 = vpop.permute.xlu1 %1179  ;;  %v1158_v36 = vrot.slane %v1157_v47, 4  ;;  %v1122_v24 = vmax.f32 %v1120_v43, %v1121_v17 }
 0x3d5   :  { %vm1186_vm5 = vcmp.eq.s32.totalorder %v1180_v40, 1 }
 0x3d6   :  { %v1190_v61 = vsel %vm1186_vm5, %v2097_v14, 0.0  ;;  %v991_v14 = vmax.f32 %v987_v23, %v988_v2  ;;  %v1036_v2 = vmax.f32 %v1034_v6, %v1035_v39  ;;  %v1159_v21 = vmax.f32 %v1157_v47, %v1158_v36 }
 0x3d7   :  { %v1194_v16 = vsel %vm153_vm4, %v1190_v61, -inf }
 0x3d8   :  { %v993_v19 = vmax.f32 %v991_v14, %v992_v59  ;;  %v1197_v52 = vmax.f32 %v1194_v16, %v1195_v10  ;;  %v1037_v12 = vrot.slane %v1036_v2, 2  ;;  %v1160_v8 = vrot.slane %v1159_v21, 2 }
 0x3d9   :  { %v1080_v59 = vrot.slane %v1079_v45, 1 }
 0x3da   :  { %v994_v32 = vrot.slane %v993_v19, 4  ;;  %v1198_v29 = vmax.f32 %v1196_v54, %v1197_v52  ;;  %v1038_v58 = vmax.f32 %v1036_v2, %v1037_v12  ;;  %v1161_v23 = vmax.f32 %v1159_v21, %v1160_v8 }
 0x3db   :  { %v1081_v1 = vmax.f32 %v1079_v45, %v1080_v59 }
 0x3dc   :  { %v995_v3 = vmax.f32 %v993_v19, %v994_v32  ;;  %v1199_v41 = vrot.slane %v1198_v29, 4  ;;  %v1039_v35 = vrot.slane %v1038_v58, 1  ;;  %v1162_v42 = vrot.slane %v1161_v23, 1 }
 0x3de   :  { %v996_v5 = vrot.slane %v995_v3, 2  ;;  %v1200_v18 = vmax.f32 %v1198_v29, %v1199_v41  ;;  %v1040_v22 = vmax.f32 %v1038_v58, %v1039_v35  ;;  %v1163_v49 = vmax.f32 %v1161_v23, %v1162_v42 }
 0x3e0   :  { %v997_v33 = vmax.f32 %v995_v3, %v996_v5  ;;  %v1201_v51 = vrot.slane %v1200_v18, 2 }
 0x3e2   :  { %v998_v28 = vrot.slane %v997_v33, 1  ;;  %v1202_v61 = vmax.f32 %v1200_v18, %v1201_v51 }
 0x3e4   :  { %v999_v26 = vmax.f32 %v997_v33, %v998_v28  ;;  %v1203_v46 = vrot.slane %v1202_v61, 1 }
 0x3e6   :  { %v1208_v14 = vsel %vm1207_vm15, %v2116_v37, %v999_v26  ;;  %v1204_v0 = vmax.f32 %v1202_v61, %v1203_v46 }
 0x3e7   :  { %v1210_v16 = vsel %vm1209_vm9, %v1208_v14, %v1040_v22 }
 0x3e8   :  { %v1212_v4 = vsel %vm1211_vm8, %v1210_v16, %v1081_v1 }
 0x3e9   :  { %v1214_v44 = vsel %vm1213_vm2, %v1212_v4, %v1122_v24 }
 0x3ea   :  { %v1216_v60 = vsel %vm1215_vm10, %v1214_v44, %v1163_v49 }
 0x3eb   :  { %v1217_v30 = vsel %vm802_vm14, %v1216_v60, %v1204_v0  ;;  %vm1224_vm14 = vcmask 523264  }
 0x433   :  { %v823_v15 = vpop.f32.mrf.mxu3 }
 0x434   :  { %v850_v62 = vmax.f32 %v823_v15, 1.0  ;;  %v1218_v15 = vmax.f32 %v1217_v30, 0.0 }
 0x435   :  { %v847_v34 = vpop.f32.mrf.mxu2 }
 0x436   :  { %1296 = vrcp.f32 %v850_v62 }
 0x43c   :  { %v1297_v20 = vpop.eup %1296 }
 0x43d   :  { %v2272_v31 = vmul.f32 %v1297_v20, %v847_v34 }
 0x43f   :  { %v853_v40 = vmul.f32 %v2272_v31, %v2272_v31 }
 0x441   :  { %v854_v27 = vsel %vm153_vm4, %v853_v40, 0.0 }
 0x442   :  { %855 = vadd.xlane.f32.xlu2 %v854_v27 }
 0x45a   :  { %1220 = vrot.lane.b32.xlu2 %v1218_v15, %s1475_s7 }
 0x4b5   :  { %v856_v10 = vpop.xlane.xlu2 %855 }
 0x4b6   :  { %v857_v19 = vmax.f32 %v856_v10, 1e-24 }
 0x4b8   :  { %1298 = vrsqrt.f32 %v857_v19  ;;  %vm864_vm0 = vweird.f32 %v857_v19 }
 0x4bd   :  { %v1221_v9 = vpop.permute.xlu2 %1220 }
 0x4be   :  { %v1299_v48 = vpop.eup %1298 }
 0x4bf   :  { %v859_v62 = vmul.f32 %v1299_v48, %v857_v19  ;;  %vm865_vm12 = vweird.f32 %v1299_v48 }
 0x4c0   :  { %vm866_vm1 = vmor %vm864_vm0, %vm865_vm12 }
 0x4c1   :  { %v860_v13 = vmul.f32 %v1299_v48, %v859_v62 }
 0x4c3   :  { %v861_v55 = vmul.f32 0.5, %v860_v13 }
 0x4c5   :  { %v862_v37 = vsub.f32 1.5, %v861_v55 }
 0x4c7   :  { %v863_v6 = vmul.f32 %v1299_v48, %v862_v37 }
 0x4c9   :  { %v867_v52 = vsel %vm866_vm1, %v1299_v48, %v863_v6 }
 0x4ca   :  { %v868_v50 = vmul.f32 %v867_v52, %v2272_v31 }
 0x4cc   :  { %v1223_v7 = vsel %vm153_vm4, %v868_v50, %v1221_v9 }
 0x4cd   :  { %1225 = vst.msk [vmem:[#allocation13] sm:$0xff] %vm1224_vm14, %v1223_v7 }
 0x4ce   :  { %1236 = dma.vmem_to_hbm [thread:$0]  %s1232_s2, 128, %s1234_s18, [#allocation4]  }
 0x4cf   :  { %1464 = dma.done.wait [#allocation4], 128  }
 0x4d0   :  { %1465 = vsyncadd [#allocation4], 4294967168 }
 0x4d1   :  { %1241 = vsyncpa [#allocation3], 1 }
 0x4d2   :  { %1242 = vsyncpa [#allocation8], 1 }
 0x4d3   :  { %1243 = vsyncpa [#allocation11], 1 }
 0x4d4   :  { %1244 = vsyncpa [#allocation4], 1 }
 0x4d5   :  { %1245 = vsyncpa [#allocation5], 1 }

</bundles_post_ra>
